<compile_context>
chip_gen: v7x
topology: tpu7x:2x2x1
jax: 0.10.0
libtpu: 0.0.40
codegen_flags: <defaults>
</compile_context>

<pallas_src>
import functools

import jax
import jax.numpy as jnp
from jax import lax
from jax.experimental import pallas as pl
from jax.experimental.pallas import tpu as pltpu

_VMEM_LIMIT = 48 * 1024 * 1024          # > 32 MiB default scope, < v7x 64 MiB physical
_NT_DIMS = (((1,), (1,)), ((), ()))     # A @ B.T (contract last dim of both operands)


# ---------------------------------------------------------------------------
# Small shape helpers
# ---------------------------------------------------------------------------

def _round_up(v, m):
    return ((v + m - 1) // m) * m


def _cpad(c):
    # lane-dense channel padding (review: pad channel / contraction dims to 128)
    return max(128, _round_up(c, 128))


def _choose_tile(n):
    # point tile: 128 when the point count is 128-aligned, else the full extent
    # (toy sizes). TODO(synk): per-generation tile sweep for very large N.
    return 128 if (n % 128 == 0) else n


def _pad_last(x, target):
    pad = target - x.shape[-1]
    if pad == 0:
        return x
    widths = [(0, 0)] * (x.ndim - 1) + [(0, pad)]
    return jnp.pad(x, widths)


def _pad2d(w, rows, cols):
    return jnp.pad(w, ((0, rows - w.shape[0]), (0, cols - w.shape[1])))


# ---------------------------------------------------------------------------
# Pallas kernels
# ---------------------------------------------------------------------------

def _knn_kernel(xq_ref, xk_ref, idx_ref, *, k):
    # xq_ref: (1, TQ, Cp) query tile; xk_ref: (1, N, Cp) all points of the batch.
    # idx_ref: (1, TQ, k) int32 -- same indices as torch.topk over -sqdist.
    q = xq_ref[0].astype(jnp.float32)        # keep kNN math fully in f32
    xall = xk_ref[0].astype(jnp.float32)
    tq = q.shape[0]
    n = xall.shape[0]

    # 2 * <q_i, x_j>, contracting the channel axis of BOTH operands (no transpose).
    inner = lax.dot_general(q, xall, _NT_DIMS, preferred_element_type=jnp.float32)
    # Row vector of |x_j|^2 produced on the lane axis via a 1-row matmul
    # (avoids an XLU transpose of the (N, 1) lane reduction).
    xsq = xall * xall
    kk = lax.dot_general(jnp.ones((1, q.shape[1]), jnp.float32), xsq, _NT_DIMS,
                         preferred_element_type=jnp.float32)          # (1, N)
    # -|q_i|^2 is constant per row -> it cannot change the top-k set; drop it.
    d = 2.0 * inner - kk                                              # (TQ, N)

    col = lax.broadcasted_iota(jnp.int32, (tq, n), 1)
    neg = jnp.float32(-3.0e38)
    for j in range(k):                       # k is small; unrolled iterative argmax
        m = jnp.max(d, axis=1, keepdims=True)                         # (TQ, 1)
        sel = jnp.min(jnp.where(d >= m, col, n), axis=1, keepdims=True)
        idx_ref[0, :, j:j + 1] = sel
        d = jnp.where(col == sel, neg, d)


def knn_indices(x, k, tile):
    # x: (B, N, Cp) channels-last (zero channel padding is distance-neutral).
    B, N, Cp = x.shape
    return pl.pallas_call(
        functools.partial(_knn_kernel, k=k),
        out_shape=jax.ShapeDtypeStruct((B, N, k), jnp.int32),
        grid=(B, N // tile),
        in_specs=[pl.BlockSpec((1, tile, Cp), lambda b, t: (b, t, 0)),
                  pl.BlockSpec((1, N, Cp), lambda b, t: (b, 0, 0))],
        out_specs=pl.BlockSpec((1, tile, k), lambda b, t: (b, t, 0)),
        compiler_params=pltpu.CompilerParams(
            dimension_semantics=("parallel", "parallel"),
            vmem_limit_bytes=_VMEM_LIMIT),
    )(x, x)


def _edge_conv_kernel(xall_ref, xq_ref, idx_ref, wa_ref, wc_ref,
                      scale_ref, shift_ref, o_ref, *, k):
    # Fused: neighbor gather (one-hot matmul in VMEM) + 1x1 conv + folded BN +
    # LeakyReLU(0.2) + SUM over the k neighbors (use_max_reduction=False path).
    xall = xall_ref[0].astype(jnp.bfloat16)   # (N, Cp)   bf16 at kernel boundary
    ctr = xq_ref[0].astype(jnp.bfloat16)      # (TN, Cp)
    idx = idx_ref[0]                          # (TN, k) int32
    wa = wa_ref[...]                          # (Cp, Coutp) bf16: rows for (nbr - ctr)
    wc = wc_ref[...]                          # (Cp, Coutp) bf16: (W_ctr - W_nbr)
    scale = scale_ref[...]                    # (1, Coutp) f32 folded BN
    shift = shift_ref[...]
    tn = ctr.shape[0]
    n = xall.shape[0]

    col = lax.broadcasted_iota(jnp.int32, (tn, n), 1)
    # (nbr - ctr) @ Wa + ctr @ Wb == nbr @ Wa + ctr @ (Wb - Wa)
    z = jnp.dot(ctr, wc, preferred_element_type=jnp.float32)          # (TN, Coutp)
    acc = jnp.zeros_like(z)
    for j in range(k):                        # k small; unrolled
        sel = idx[:, j:j + 1]                                         # (TN, 1)
        onehot = (col == sel).astype(jnp.bfloat16)                    # (TN, N)
        nbr = jnp.dot(onehot, xall, preferred_element_type=jnp.float32)
        h = jnp.dot(nbr.astype(jnp.bfloat16), wa,
                    preferred_element_type=jnp.float32) + z           # (TN, Coutp)
        h = h * scale + shift                                         # folded BN (f32)
        h = jnp.where(h > 0, h, 0.2 * h)                              # LeakyReLU(0.2)
        acc = acc + h                                                 # sum over neighbors
    o_ref[0] = acc


def edge_conv(x, idx, wa, wc, scale, shift, tile):
    # x: (B, N, Cp) f32; idx: (B, N, k) int32 -> (B, N, Coutp) f32 (lane-dense).
    B, N, Cp = x.shape
    k = idx.shape[-1]
    Coutp = wa.shape[1]
    return pl.pallas_call(
        functools.partial(_edge_conv_kernel, k=k),
        out_shape=jax.ShapeDtypeStruct((B, N, Coutp), jnp.float32),
        grid=(B, N // tile),
        in_specs=[
            pl.BlockSpec((1, N, Cp), lambda b, t: (b, 0, 0)),         # all points
            pl.BlockSpec((1, tile, Cp), lambda b, t: (b, t, 0)),      # tile centers
            pl.BlockSpec((1, tile, k), lambda b, t: (b, t, 0)),       # neighbor ids
            pl.BlockSpec((Cp, Coutp), lambda b, t: (0, 0)),
            pl.BlockSpec((Cp, Coutp), lambda b, t: (0, 0)),
            pl.BlockSpec((1, Coutp), lambda b, t: (0, 0)),
            pl.BlockSpec((1, Coutp), lambda b, t: (0, 0)),
        ],
        out_specs=pl.BlockSpec((1, tile, Coutp), lambda b, t: (b, t, 0)),
        compiler_params=pltpu.CompilerParams(
            dimension_semantics=("parallel", "parallel"),
            vmem_limit_bytes=_VMEM_LIMIT),
    )(x, x, idx, wa, wc, scale, shift)


def _head_kernel(x1_ref, x2_ref, x3_ref, x4_ref, w5_ref, scale_ref, shift_ref,
                 wr_ref, o_ref, *, splits):
    # conv5 (1x1) + bn5 + LeakyReLU + reg_layer. The cat(x1..x4) is realized as
    # summed per-block matmuls (no HBM concat); the output is written with the
    # point axis on lanes: (1, Co, TN) -> lane-dense stores, no final transpose.
    h = None
    off = 0
    for xr, c in zip((x1_ref, x2_ref, x3_ref, x4_ref), splits):
        part = jnp.dot(xr[0].astype(jnp.bfloat16), w5_ref[off:off + c, :],
                       preferred_element_type=jnp.float32)            # (TN, Ep)
        h = part if h is None else h + part
        off += c
    h = h * scale_ref[...] + shift_ref[...]
    h = jnp.where(h > 0, h, 0.2 * h)
    o_ref[0] = lax.dot_general(wr_ref[...], h.astype(jnp.bfloat16), _NT_DIMS,
                               preferred_element_type=jnp.float32)    # (Co, TN)


def head(xs, w5, scale, shift, wr, tile):
    B, N, _ = xs[0].shape
    splits = tuple(int(x.shape[-1]) for x in xs)
    Ep = w5.shape[1]
    Co = wr.shape[0]
    x_specs = [pl.BlockSpec((1, tile, c), lambda b, t: (b, t, 0)) for c in splits]
    return pl.pallas_call(
        functools.partial(_head_kernel, splits=splits),
        out_shape=jax.ShapeDtypeStruct((B, Co, N), jnp.float32),
        grid=(B, N // tile),
        in_specs=x_specs + [
            pl.BlockSpec((sum(splits), Ep), lambda b, t: (0, 0)),
            pl.BlockSpec((1, Ep), lambda b, t: (0, 0)),
            pl.BlockSpec((1, Ep), lambda b, t: (0, 0)),
            pl.BlockSpec((Co, Ep), lambda b, t: (0, 0)),
        ],
        out_specs=pl.BlockSpec((1, Co, tile), lambda b, t: (b, 0, t)),
        compiler_params=pltpu.CompilerParams(
            dimension_semantics=("parallel", "parallel"),
            vmem_limit_bytes=_VMEM_LIMIT),
    )(*xs, w5, scale, shift, wr)


# ---------------------------------------------------------------------------
# Parameters (raw PyTorch-like) + preparation (BN folding, padding, bf16 cast)
# ---------------------------------------------------------------------------

def fold_bn(bn, eps=1e-5):
    gamma, beta, mean, var = bn
    scale = gamma / jnp.sqrt(var + eps)
    shift = beta - mean * scale
    return scale, shift


def init_params(key, input_features=1, emb_dims=32, output_channels=1):
    # Raw parameters mirroring the PyTorch module: 1x1 conv weights stored in
    # (Cin, Cout) matmul form (== W[:, :, 0, 0].T), BN as (gamma, beta, mean, var).
    def bn_params(kk, c):
        k1, k2, k3, k4 = jax.random.split(kk, 4)
        gamma = 1.0 + 0.1 * jax.random.normal(k1, (c,), jnp.float32)
        beta = 0.1 * jax.random.normal(k2, (c,), jnp.float32)
        mean = 0.1 * jax.random.normal(k3, (c,), jnp.float32)
        var = 1.0 + 0.1 * jax.random.uniform(k4, (c,), jnp.float32)
        return gamma, beta, mean, var

    keys = jax.random.split(key, 11)
    p = {}
    p["w1"] = 0.5 * jax.random.normal(keys[0], (2 * input_features, 64), jnp.float32)
    p["bn1"] = bn_params(keys[1], 64)
    p["w2"] = 0.2 * jax.random.normal(keys[2], (128, 64), jnp.float32)
    p["bn2"] = bn_params(keys[3], 64)
    p["w3"] = 0.2 * jax.random.normal(keys[4], (128, 128), jnp.float32)
    p["bn3"] = bn_params(keys[5], 128)
    p["w4"] = 0.1 * jax.random.normal(keys[6], (256, 256), jnp.float32)
    p["bn4"] = bn_params(keys[7], 256)
    p["w5"] = 0.1 * jax.random.normal(keys[8], (512, emb_dims), jnp.float32)
    p["bn5"] = bn_params(keys[9], emb_dims)
    p["wreg"] = 0.1 * jax.random.normal(keys[10], (emb_dims, output_channels), jnp.float32)
    return p


def _prep_edge_layer(w, bn, cin, cout):
    # Split (2*Cin, Cout) into the (nbr-ctr)/ctr halves, fold to the gather-free
    # form (Wa, Wb - Wa), pad to lane-dense shapes, cast to bf16; fold BN (f32).
    cin_p, cout_p = _cpad(cin), _cpad(cout)
    wa_raw = w[:cin]
    wb_raw = w[cin:]
    wa = _pad2d(wa_raw, cin_p, cout_p).astype(jnp.bfloat16)
    wc = _pad2d(wb_raw - wa_raw, cin_p, cout_p).astype(jnp.bfloat16)
    scale, shift = fold_bn(bn)
    scale = _pad_last(scale[None, :], cout_p)
    shift = _pad_last(shift[None, :], cout_p)
    return wa, wc, scale, shift


def prepare_params(p, input_features):
    q = {}
    cins = (input_features, 64, 64, 128)
    couts = (64, 64, 128, 256)
    for i in range(4):
        q[f"edge{i + 1}"] = _prep_edge_layer(p[f"w{i + 1}"], p[f"bn{i + 1}"],
                                             cins[i], couts[i])
    # head: re-lay w5 rows onto the zero-padded channel layout of (x1|x2|x3|x4).
    emb = p["w5"].shape[1]
    ep = _cpad(emb)
    row_blocks = []
    off = 0
    for c in couts:
        row_blocks.append(_pad2d(p["w5"][off:off + c], _cpad(c), ep))
        off += c
    q["w5"] = jnp.concatenate(row_blocks, axis=0).astype(jnp.bfloat16)   # (640, Ep)
    s5, t5 = fold_bn(p["bn5"])
    q["scale5"] = _pad_last(s5[None, :], ep)
    q["shift5"] = _pad_last(t5[None, :], ep)
    q["wreg"] = _pad2d(p["wreg"].T, p["wreg"].shape[1], ep).astype(jnp.bfloat16)  # (Co, Ep)
    return q


# ---------------------------------------------------------------------------
# Forward
# ---------------------------------------------------------------------------

def dgcnn_forward(params, x, k):
    # x: (B, C_in, N) float32, PyTorch NCW at the boundary -> (B, Co, N).
    B, C, N = x.shape
    tile = _choose_tile(N)
    q = prepare_params(params, input_features=C)

    # channels-last, zero-padded channel lanes (padding is distance/conv-neutral)
    xi = _pad_last(jnp.transpose(x, (0, 2, 1)), _cpad(C))

    feats = []
    for i in range(4):
        idx = knn_indices(xi, k, tile)                       # fused kNN (Pallas)
        wa, wc, sc, sh = q[f"edge{i + 1}"]
        xi = edge_conv(xi, idx, wa, wc, sc, sh, tile)        # fused gather+conv+BN+act+sum
        feats.append(xi)

    return head(feats, q["w5"], q["scale5"], q["shift5"], q["wreg"], tile)


if __name__ == "__main__":
    key = jax.random.PRNGKey(0)
    kp, kx = jax.random.split(key)

    B, C_IN, N, K = 2, 1, 16, 4
    EMB_DIMS, OUT_CH = 32, 1

    params = init_params(kp, input_features=C_IN, emb_dims=EMB_DIMS,
                         output_channels=OUT_CH)
    x = jax.random.normal(kx, (B, C_IN, N), dtype=jnp.float32)

    fwd = jax.jit(functools.partial(dgcnn_forward, k=K))
    y = fwd(params, x)
    jax.block_until_ready(y)
    assert y.shape == (B, OUT_CH, N), y.shape
    assert bool(jnp.all(jnp.isfinite(y)))
    print("KERNEL_OK")
</pallas_src>

<mosaic_0001>
module attributes {stable_mosaic.version = 11 : i64} {
  func.func @_knn_kernel(%arg0: i32, %arg1: i32, %arg2: memref<1x16x128xf32, #tpu.memory_space<vmem>>, %arg3: memref<1x16x128xf32, #tpu.memory_space<vmem>>, %arg4: memref<1x16x4xi32, #tpu.memory_space<vmem>>) attributes {dimension_semantics = [#tpu.dimension_semantics<parallel>, #tpu.dimension_semantics<parallel>], iteration_bounds = array<i64: 2, 1>, scalar_prefetch = 0 : i64, scratch_operands = 0 : i64, tpu.core_type = #tpu.core_type<tc>, window_params = [{transform_indices = @transform_0, window_bounds = array<i64: 1, 16, 128>}, {transform_indices = @transform_1, window_bounds = array<i64: 1, 16, 128>}, {transform_indices = @transform_2, window_bounds = array<i64: 1, 16, 4>}]} {
    %c0 = arith.constant 0 : index
    %c0_0 = arith.constant 0 : index
    %c0_1 = arith.constant 0 : index
    %0 = vector.load %arg2[%c0, %c0_0, %c0_1] : memref<1x16x128xf32, #tpu.memory_space<vmem>>, vector<1x16x128xf32>
    %1 = vector.shape_cast %0 : vector<1x16x128xf32> to vector<16x128xf32>
    %c0_2 = arith.constant 0 : index
    %c0_3 = arith.constant 0 : index
    %c0_4 = arith.constant 0 : index
    %2 = vector.load %arg3[%c0_2, %c0_3, %c0_4] : memref<1x16x128xf32, #tpu.memory_space<vmem>>, vector<1x16x128xf32>
    %3 = vector.shape_cast %2 : vector<1x16x128xf32> to vector<16x128xf32>
    %cst = arith.constant dense<0.000000e+00> : vector<16x16xf32>
    %4 = tpu.matmul %1, %3, %cst {dimension_numbers = #tpu.dot_dimension_numbers<[1], [1], [0], [0], [0, 0, 1, 0], [], []>} : vector<16x128xf32>, vector<16x128xf32>, vector<16x16xf32> -> vector<16x16xf32>
    %5 = arith.mulf %3, %3 : vector<16x128xf32>
    %cst_5 = arith.constant 1.000000e+00 : f32
    %6 = vector.broadcast %cst_5 : f32 to vector<1x128xf32>
    %cst_6 = arith.constant dense<0.000000e+00> : vector<1x16xf32>
    %7 = tpu.matmul %6, %5, %cst_6 {dimension_numbers = #tpu.dot_dimension_numbers<[1], [1], [0], [0], [0, 0, 1, 0], [], []>} : vector<1x128xf32>, vector<16x128xf32>, vector<1x16xf32> -> vector<1x16xf32>
    %cst_7 = arith.constant 2.000000e+00 : f32
    %8 = vector.broadcast %cst_7 : f32 to vector<16x16xf32>
    %9 = arith.mulf %8, %4 : vector<16x16xf32>
    %10 = vector.broadcast %7 : vector<1x16xf32> to vector<16x16xf32>
    %11 = arith.subf %9, %10 : vector<16x16xf32>
    %12 = tpu.iota {dimensions = array<i32: 1>} : vector<16x16xi32>
    %cst_8 = arith.constant dense<0xFF800000> : vector<16xf32>
    %13 = vector.multi_reduction <maximumf>, %11, %cst_8 [1] : vector<16x16xf32> to vector<16xf32>
    %14 = vector.shape_cast %13 : vector<16xf32> to vector<16x1xf32>
    %15 = vector.broadcast %14 : vector<16x1xf32> to vector<16x16xf32>
    %16 = arith.cmpf oge, %11, %15 : vector<16x16xf32>
    %c16_i32 = arith.constant 16 : i32
    %17 = vector.broadcast %c16_i32 : i32 to vector<16x16xi32>
    %18 = arith.select %16, %12, %17 : vector<16x16xi1>, vector<16x16xi32>
    %cst_9 = arith.constant dense<2147483647> : vector<16xi32>
    %19 = vector.multi_reduction <minsi>, %18, %cst_9 [1] : vector<16x16xi32> to vector<16xi32>
    %20 = vector.shape_cast %19 : vector<16xi32> to vector<16x1xi32>
    %c0_10 = arith.constant 0 : index
    %c0_11 = arith.constant 0 : index
    %c0_12 = arith.constant 0 : index
    %21 = vector.load %arg4[%c0_10, %c0_11, %c0_12] : memref<1x16x4xi32, #tpu.memory_space<vmem>>, vector<1x16x1xi32>
    %22 = vector.shape_cast %21 : vector<1x16x1xi32> to vector<16x1xi32>
    %23 = vector.shape_cast %20 : vector<16x1xi32> to vector<1x16x1xi32>
    tpu.vector_store %arg4[%c0_10, %c0_11, %c0_12], %23 {strides = array<i32>} : memref<1x16x4xi32, #tpu.memory_space<vmem>>, vector<1x16x1xi32>,
    %24 = vector.broadcast %20 : vector<16x1xi32> to vector<16x16xi32>
    %25 = arith.cmpi eq, %12, %24 : vector<16x16xi32>
    %cst_13 = arith.constant -3.000000e+38 : f32
    %26 = vector.broadcast %cst_13 : f32 to vector<16x16xf32>
    %27 = arith.select %25, %26, %11 : vector<16x16xi1>, vector<16x16xf32>
    %cst_14 = arith.constant dense<0xFF800000> : vector<16xf32>
    %28 = vector.multi_reduction <maximumf>, %27, %cst_14 [1] : vector<16x16xf32> to vector<16xf32>
    %29 = vector.shape_cast %28 : vector<16xf32> to vector<16x1xf32>
    %30 = vector.broadcast %29 : vector<16x1xf32> to vector<16x16xf32>
    %31 = arith.cmpf oge, %27, %30 : vector<16x16xf32>
    %c16_i32_15 = arith.constant 16 : i32
    %32 = vector.broadcast %c16_i32_15 : i32 to vector<16x16xi32>
    %33 = arith.select %31, %12, %32 : vector<16x16xi1>, vector<16x16xi32>
    %cst_16 = arith.constant dense<2147483647> : vector<16xi32>
    %34 = vector.multi_reduction <minsi>, %33, %cst_16 [1] : vector<16x16xi32> to vector<16xi32>
    %35 = vector.shape_cast %34 : vector<16xi32> to vector<16x1xi32>
    %c0_17 = arith.constant 0 : index
    %c0_18 = arith.constant 0 : index
    %c1 = arith.constant 1 : index
    %36 = vector.load %arg4[%c0_17, %c0_18, %c1] : memref<1x16x4xi32, #tpu.memory_space<vmem>>, vector<1x16x1xi32>
    %37 = vector.shape_cast %36 : vector<1x16x1xi32> to vector<16x1xi32>
    %38 = vector.shape_cast %35 : vector<16x1xi32> to vector<1x16x1xi32>
    tpu.vector_store %arg4[%c0_17, %c0_18, %c1], %38 {strides = array<i32>} : memref<1x16x4xi32, #tpu.memory_space<vmem>>, vector<1x16x1xi32>,
    %39 = vector.broadcast %35 : vector<16x1xi32> to vector<16x16xi32>
    %40 = arith.cmpi eq, %12, %39 : vector<16x16xi32>
    %cst_19 = arith.constant -3.000000e+38 : f32
    %41 = vector.broadcast %cst_19 : f32 to vector<16x16xf32>
    %42 = arith.select %40, %41, %27 : vector<16x16xi1>, vector<16x16xf32>
    %cst_20 = arith.constant dense<0xFF800000> : vector<16xf32>
    %43 = vector.multi_reduction <maximumf>, %42, %cst_20 [1] : vector<16x16xf32> to vector<16xf32>
    %44 = vector.shape_cast %43 : vector<16xf32> to vector<16x1xf32>
    %45 = vector.broadcast %44 : vector<16x1xf32> to vector<16x16xf32>
    %46 = arith.cmpf oge, %42, %45 : vector<16x16xf32>
    %c16_i32_21 = arith.constant 16 : i32
    %47 = vector.broadcast %c16_i32_21 : i32 to vector<16x16xi32>
    %48 = arith.select %46, %12, %47 : vector<16x16xi1>, vector<16x16xi32>
    %cst_22 = arith.constant dense<2147483647> : vector<16xi32>
    %49 = vector.multi_reduction <minsi>, %48, %cst_22 [1] : vector<16x16xi32> to vector<16xi32>
    %50 = vector.shape_cast %49 : vector<16xi32> to vector<16x1xi32>
    %c0_23 = arith.constant 0 : index
    %c0_24 = arith.constant 0 : index
    %c2 = arith.constant 2 : index
    %51 = vector.load %arg4[%c0_23, %c0_24, %c2] : memref<1x16x4xi32, #tpu.memory_space<vmem>>, vector<1x16x1xi32>
    %52 = vector.shape_cast %51 : vector<1x16x1xi32> to vector<16x1xi32>
    %53 = vector.shape_cast %50 : vector<16x1xi32> to vector<1x16x1xi32>
    tpu.vector_store %arg4[%c0_23, %c0_24, %c2], %53 {strides = array<i32>} : memref<1x16x4xi32, #tpu.memory_space<vmem>>, vector<1x16x1xi32>,
    %54 = vector.broadcast %50 : vector<16x1xi32> to vector<16x16xi32>
    %55 = arith.cmpi eq, %12, %54 : vector<16x16xi32>
    %cst_25 = arith.constant -3.000000e+38 : f32
    %56 = vector.broadcast %cst_25 : f32 to vector<16x16xf32>
    %57 = arith.select %55, %56, %42 : vector<16x16xi1>, vector<16x16xf32>
    %cst_26 = arith.constant dense<0xFF800000> : vector<16xf32>
    %58 = vector.multi_reduction <maximumf>, %57, %cst_26 [1] : vector<16x16xf32> to vector<16xf32>
    %59 = vector.shape_cast %58 : vector<16xf32> to vector<16x1xf32>
    %60 = vector.broadcast %59 : vector<16x1xf32> to vector<16x16xf32>
    %61 = arith.cmpf oge, %57, %60 : vector<16x16xf32>
    %c16_i32_27 = arith.constant 16 : i32
    %62 = vector.broadcast %c16_i32_27 : i32 to vector<16x16xi32>
    %63 = arith.select %61, %12, %62 : vector<16x16xi1>, vector<16x16xi32>
    %cst_28 = arith.constant dense<2147483647> : vector<16xi32>
    %64 = vector.multi_reduction <minsi>, %63, %cst_28 [1] : vector<16x16xi32> to vector<16xi32>
    %65 = vector.shape_cast %64 : vector<16xi32> to vector<16x1xi32>
    %c0_29 = arith.constant 0 : index
    %c0_30 = arith.constant 0 : index
    %c3 = arith.constant 3 : index
    %66 = vector.load %arg4[%c0_29, %c0_30, %c3] : memref<1x16x4xi32, #tpu.memory_space<vmem>>, vector<1x16x1xi32>
    %67 = vector.shape_cast %66 : vector<1x16x1xi32> to vector<16x1xi32>
    %68 = vector.shape_cast %65 : vector<16x1xi32> to vector<1x16x1xi32>
    tpu.vector_store %arg4[%c0_29, %c0_30, %c3], %68 {strides = array<i32>} : memref<1x16x4xi32, #tpu.memory_space<vmem>>, vector<1x16x1xi32>,
    return
  }
  func.func @transform_0(%arg0: i32, %arg1: i32) -> (i32, i32, i32) {
    %c0_i32 = arith.constant 0 : i32
    %c0_i32_0 = arith.constant 0 : i32
    return %arg0, %arg1, %c0_i32 : i32, i32, i32
  }
  func.func @transform_1(%arg0: i32, %arg1: i32) -> (i32, i32, i32) {
    %c0_i32 = arith.constant 0 : i32
    %c0_i32_0 = arith.constant 0 : i32
    %c0_i32_1 = arith.constant 0 : i32
    return %arg0, %c0_i32, %c0_i32_0 : i32, i32, i32
  }
  func.func @transform_2(%arg0: i32, %arg1: i32) -> (i32, i32, i32) {
    %c0_i32 = arith.constant 0 : i32
    %c0_i32_0 = arith.constant 0 : i32
    return %arg0, %arg1, %c0_i32 : i32, i32, i32
  }
}

module attributes {stable_mosaic.version = 11 : i64} {
  func.func @_edge_conv_kernel(%arg0: i32, %arg1: i32, %arg2: memref<1x16x128xf32, #tpu.memory_space<vmem>>, %arg3: memref<1x16x128xf32, #tpu.memory_space<vmem>>, %arg4: memref<1x16x4xi32, #tpu.memory_space<vmem>>, %arg5: memref<128x128xbf16, #tpu.memory_space<vmem>>, %arg6: memref<128x128xbf16, #tpu.memory_space<vmem>>, %arg7: memref<1x128xf32, #tpu.memory_space<vmem>>, %arg8: memref<1x128xf32, #tpu.memory_space<vmem>>, %arg9: memref<1x16x128xf32, #tpu.memory_space<vmem>>) attributes {dimension_semantics = [#tpu.dimension_semantics<parallel>, #tpu.dimension_semantics<parallel>], iteration_bounds = array<i64: 2, 1>, scalar_prefetch = 0 : i64, scratch_operands = 0 : i64, tpu.core_type = #tpu.core_type<tc>, window_params = [{transform_indices = @transform_0, window_bounds = array<i64: 1, 16, 128>}, {transform_indices = @transform_1, window_bounds = array<i64: 1, 16, 128>}, {transform_indices = @transform_2, window_bounds = array<i64: 1, 16, 4>}, {pipeline_mode = #tpu.pipeline_mode<synchronous>, transform_indices = @transform_3, window_bounds = array<i64: 128, 128>}, {pipeline_mode = #tpu.pipeline_mode<synchronous>, transform_indices = @transform_4, window_bounds = array<i64: 128, 128>}, {pipeline_mode = #tpu.pipeline_mode<synchronous>, transform_indices = @transform_5, window_bounds = array<i64: 1, 128>}, {pipeline_mode = #tpu.pipeline_mode<synchronous>, transform_indices = @transform_6, window_bounds = array<i64: 1, 128>}, {transform_indices = @transform_7, window_bounds = array<i64: 1, 16, 128>}]} {
    %c0 = arith.constant 0 : index
    %c0_0 = arith.constant 0 : index
    %c0_1 = arith.constant 0 : index
    %0 = vector.load %arg2[%c0, %c0_0, %c0_1] : memref<1x16x128xf32, #tpu.memory_space<vmem>>, vector<1x16x128xf32>
    %1 = vector.shape_cast %0 : vector<1x16x128xf32> to vector<16x128xf32>
    %2 = arith.truncf %1 : vector<16x128xf32> to vector<16x128xbf16>
    %c0_2 = arith.constant 0 : index
    %c0_3 = arith.constant 0 : index
    %c0_4 = arith.constant 0 : index
    %3 = vector.load %arg3[%c0_2, %c0_3, %c0_4] : memref<1x16x128xf32, #tpu.memory_space<vmem>>, vector<1x16x128xf32>
    %4 = vector.shape_cast %3 : vector<1x16x128xf32> to vector<16x128xf32>
    %5 = arith.truncf %4 : vector<16x128xf32> to vector<16x128xbf16>
    %c0_5 = arith.constant 0 : index
    %c0_6 = arith.constant 0 : index
    %c0_7 = arith.constant 0 : index
    %6 = vector.load %arg4[%c0_5, %c0_6, %c0_7] : memref<1x16x4xi32, #tpu.memory_space<vmem>>, vector<1x16x4xi32>
    %7 = vector.shape_cast %6 : vector<1x16x4xi32> to vector<16x4xi32>
    %c0_8 = arith.constant 0 : index
    %c0_9 = arith.constant 0 : index
    %8 = vector.load %arg5[%c0_8, %c0_9] : memref<128x128xbf16, #tpu.memory_space<vmem>>, vector<128x128xbf16>
    %c0_10 = arith.constant 0 : index
    %c0_11 = arith.constant 0 : index
    %9 = vector.load %arg6[%c0_10, %c0_11] : memref<128x128xbf16, #tpu.memory_space<vmem>>, vector<128x128xbf16>
    %c0_12 = arith.constant 0 : index
    %c0_13 = arith.constant 0 : index
    %10 = vector.load %arg7[%c0_12, %c0_13] : memref<1x128xf32, #tpu.memory_space<vmem>>, vector<1x128xf32>
    %c0_14 = arith.constant 0 : index
    %c0_15 = arith.constant 0 : index
    %11 = vector.load %arg8[%c0_14, %c0_15] : memref<1x128xf32, #tpu.memory_space<vmem>>, vector<1x128xf32>
    %12 = tpu.iota {dimensions = array<i32: 1>} : vector<16x16xi32>
    %cst = arith.constant dense<0.000000e+00> : vector<16x128xf32>
    %13 = tpu.matmul %5, %9, %cst {dimension_numbers = #tpu.dot_dimension_numbers<[1], [0], [0], [1], [0, 0, 1, 1], [], []>} : vector<16x128xbf16>, vector<128x128xbf16>, vector<16x128xf32> -> vector<16x128xf32>
    %cst_16 = arith.constant 0.000000e+00 : f32
    %14 = vector.broadcast %cst_16 : f32 to vector<16x128xf32>
    %15 = vector.extract_strided_slice %7 {offsets = [0, 0], sizes = [16, 1], strides = [1, 1]} : vector<16x4xi32> to vector<16x1xi32>
    %16 = vector.broadcast %15 : vector<16x1xi32> to vector<16x16xi32>
    %17 = arith.cmpi eq, %12, %16 : vector<16x16xi32>
    %18 = arith.extui %17 : vector<16x16xi1> to vector<16x16xi32>
    %19 = arith.sitofp %18 : vector<16x16xi32> to vector<16x16xf32>
    %20 = arith.truncf %19 : vector<16x16xf32> to vector<16x16xbf16>
    %cst_17 = arith.constant dense<0.000000e+00> : vector<16x128xf32>
    %21 = tpu.matmul %20, %2, %cst_17 {dimension_numbers = #tpu.dot_dimension_numbers<[1], [0], [0], [1], [0, 0, 1, 1], [], []>} : vector<16x16xbf16>, vector<16x128xbf16>, vector<16x128xf32> -> vector<16x128xf32>
    %22 = arith.truncf %21 : vector<16x128xf32> to vector<16x128xbf16>
    %cst_18 = arith.constant dense<0.000000e+00> : vector<16x128xf32>
    %23 = tpu.matmul %22, %8, %cst_18 {dimension_numbers = #tpu.dot_dimension_numbers<[1], [0], [0], [1], [0, 0, 1, 1], [], []>} : vector<16x128xbf16>, vector<128x128xbf16>, vector<16x128xf32> -> vector<16x128xf32>
    %24 = arith.addf %23, %13 : vector<16x128xf32>
    %25 = vector.broadcast %10 : vector<1x128xf32> to vector<16x128xf32>
    %26 = arith.mulf %24, %25 : vector<16x128xf32>
    %27 = vector.broadcast %11 : vector<1x128xf32> to vector<16x128xf32>
    %28 = arith.addf %26, %27 : vector<16x128xf32>
    %cst_19 = arith.constant 0.000000e+00 : f32
    %29 = vector.broadcast %cst_19 : f32 to vector<16x128xf32>
    %30 = arith.cmpf ogt, %28, %29 : vector<16x128xf32>
    %cst_20 = arith.constant 2.000000e-01 : f32
    %31 = vector.broadcast %cst_20 : f32 to vector<16x128xf32>
    %32 = arith.mulf %31, %28 : vector<16x128xf32>
    %33 = arith.select %30, %28, %32 : vector<16x128xi1>, vector<16x128xf32>
    %34 = arith.addf %14, %33 : vector<16x128xf32>
    %35 = vector.extract_strided_slice %7 {offsets = [0, 1], sizes = [16, 1], strides = [1, 1]} : vector<16x4xi32> to vector<16x1xi32>
    %36 = vector.broadcast %35 : vector<16x1xi32> to vector<16x16xi32>
    %37 = arith.cmpi eq, %12, %36 : vector<16x16xi32>
    %38 = arith.extui %37 : vector<16x16xi1> to vector<16x16xi32>
    %39 = arith.sitofp %38 : vector<16x16xi32> to vector<16x16xf32>
    %40 = arith.truncf %39 : vector<16x16xf32> to vector<16x16xbf16>
    %cst_21 = arith.constant dense<0.000000e+00> : vector<16x128xf32>
    %41 = tpu.matmul %40, %2, %cst_21 {dimension_numbers = #tpu.dot_dimension_numbers<[1], [0], [0], [1], [0, 0, 1, 1], [], []>} : vector<16x16xbf16>, vector<16x128xbf16>, vector<16x128xf32> -> vector<16x128xf32>
    %42 = arith.truncf %41 : vector<16x128xf32> to vector<16x128xbf16>
    %cst_22 = arith.constant dense<0.000000e+00> : vector<16x128xf32>
    %43 = tpu.matmul %42, %8, %cst_22 {dimension_numbers = #tpu.dot_dimension_numbers<[1], [0], [0], [1], [0, 0, 1, 1], [], []>} : vector<16x128xbf16>, vector<128x128xbf16>, vector<16x128xf32> -> vector<16x128xf32>
    %44 = arith.addf %43, %13 : vector<16x128xf32>
    %45 = vector.broadcast %10 : vector<1x128xf32> to vector<16x128xf32>
    %46 = arith.mulf %44, %45 : vector<16x128xf32>
    %47 = vector.broadcast %11 : vector<1x128xf32> to vector<16x128xf32>
    %48 = arith.addf %46, %47 : vector<16x128xf32>
    %cst_23 = arith.constant 0.000000e+00 : f32
    %49 = vector.broadcast %cst_23 : f32 to vector<16x128xf32>
    %50 = arith.cmpf ogt, %48, %49 : vector<16x128xf32>
    %cst_24 = arith.constant 2.000000e-01 : f32
    %51 = vector.broadcast %cst_24 : f32 to vector<16x128xf32>
    %52 = arith.mulf %51, %48 : vector<16x128xf32>
    %53 = arith.select %50, %48, %52 : vector<16x128xi1>, vector<16x128xf32>
    %54 = arith.addf %34, %53 : vector<16x128xf32>
    %55 = vector.extract_strided_slice %7 {offsets = [0, 2], sizes = [16, 1], strides = [1, 1]} : vector<16x4xi32> to vector<16x1xi32>
    %56 = vector.broadcast %55 : vector<16x1xi32> to vector<16x16xi32>
    %57 = arith.cmpi eq, %12, %56 : vector<16x16xi32>
    %58 = arith.extui %57 : vector<16x16xi1> to vector<16x16xi32>
    %59 = arith.sitofp %58 : vector<16x16xi32> to vector<16x16xf32>
    %60 = arith.truncf %59 : vector<16x16xf32> to vector<16x16xbf16>
    %cst_25 = arith.constant dense<0.000000e+00> : vector<16x128xf32>
    %61 = tpu.matmul %60, %2, %cst_25 {dimension_numbers = #tpu.dot_dimension_numbers<[1], [0], [0], [1], [0, 0, 1, 1], [], []>} : vector<16x16xbf16>, vector<16x128xbf16>, vector<16x128xf32> -> vector<16x128xf32>
    %62 = arith.truncf %61 : vector<16x128xf32> to vector<16x128xbf16>
    %cst_26 = arith.constant dense<0.000000e+00> : vector<16x128xf32>
    %63 = tpu.matmul %62, %8, %cst_26 {dimension_numbers = #tpu.dot_dimension_numbers<[1], [0], [0], [1], [0, 0, 1, 1], [], []>} : vector<16x128xbf16>, vector<128x128xbf16>, vector<16x128xf32> -> vector<16x128xf32>
    %64 = arith.addf %63, %13 : vector<16x128xf32>
    %65 = vector.broadcast %10 : vector<1x128xf32> to vector<16x128xf32>
    %66 = arith.mulf %64, %65 : vector<16x128xf32>
    %67 = vector.broadcast %11 : vector<1x128xf32> to vector<16x128xf32>
    %68 = arith.addf %66, %67 : vector<16x128xf32>
    %cst_27 = arith.constant 0.000000e+00 : f32
    %69 = vector.broadcast %cst_27 : f32 to vector<16x128xf32>
    %70 = arith.cmpf ogt, %68, %69 : vector<16x128xf32>
    %cst_28 = arith.constant 2.000000e-01 : f32
    %71 = vector.broadcast %cst_28 : f32 to vector<16x128xf32>
    %72 = arith.mulf %71, %68 : vector<16x128xf32>
    %73 = arith.select %70, %68, %72 : vector<16x128xi1>, vector<16x128xf32>
    %74 = arith.addf %54, %73 : vector<16x128xf32>
    %75 = vector.extract_strided_slice %7 {offsets = [0, 3], sizes = [16, 1], strides = [1, 1]} : vector<16x4xi32> to vector<16x1xi32>
    %76 = vector.broadcast %75 : vector<16x1xi32> to vector<16x16xi32>
    %77 = arith.cmpi eq, %12, %76 : vector<16x16xi32>
    %78 = arith.extui %77 : vector<16x16xi1> to vector<16x16xi32>
    %79 = arith.sitofp %78 : vector<16x16xi32> to vector<16x16xf32>
    %80 = arith.truncf %79 : vector<16x16xf32> to vector<16x16xbf16>
    %cst_29 = arith.constant dense<0.000000e+00> : vector<16x128xf32>
    %81 = tpu.matmul %80, %2, %cst_29 {dimension_numbers = #tpu.dot_dimension_numbers<[1], [0], [0], [1], [0, 0, 1, 1], [], []>} : vector<16x16xbf16>, vector<16x128xbf16>, vector<16x128xf32> -> vector<16x128xf32>
    %82 = arith.truncf %81 : vector<16x128xf32> to vector<16x128xbf16>
    %cst_30 = arith.constant dense<0.000000e+00> : vector<16x128xf32>
    %83 = tpu.matmul %82, %8, %cst_30 {dimension_numbers = #tpu.dot_dimension_numbers<[1], [0], [0], [1], [0, 0, 1, 1], [], []>} : vector<16x128xbf16>, vector<128x128xbf16>, vector<16x128xf32> -> vector<16x128xf32>
    %84 = arith.addf %83, %13 : vector<16x128xf32>
    %85 = vector.broadcast %10 : vector<1x128xf32> to vector<16x128xf32>
    %86 = arith.mulf %84, %85 : vector<16x128xf32>
    %87 = vector.broadcast %11 : vector<1x128xf32> to vector<16x128xf32>
    %88 = arith.addf %86, %87 : vector<16x128xf32>
    %cst_31 = arith.constant 0.000000e+00 : f32
    %89 = vector.broadcast %cst_31 : f32 to vector<16x128xf32>
    %90 = arith.cmpf ogt, %88, %89 : vector<16x128xf32>
    %cst_32 = arith.constant 2.000000e-01 : f32
    %91 = vector.broadcast %cst_32 : f32 to vector<16x128xf32>
    %92 = arith.mulf %91, %88 : vector<16x128xf32>
    %93 = arith.select %90, %88, %92 : vector<16x128xi1>, vector<16x128xf32>
    %94 = arith.addf %74, %93 : vector<16x128xf32>
    %c0_33 = arith.constant 0 : index
    %c0_34 = arith.constant 0 : index
    %c0_35 = arith.constant 0 : index
    %95 = vector.load %arg9[%c0_33, %c0_34, %c0_35] : memref<1x16x128xf32, #tpu.memory_space<vmem>>, vector<1x16x128xf32>
    %96 = vector.shape_cast %95 : vector<1x16x128xf32> to vector<16x128xf32>
    %97 = vector.shape_cast %94 : vector<16x128xf32> to vector<1x16x128xf32>
    tpu.vector_store %arg9[%c0_33, %c0_34, %c0_35], %97 {strides = array<i32>} : memref<1x16x128xf32, #tpu.memory_space<vmem>>, vector<1x16x128xf32>,
    return
  }
  func.func @transform_0(%arg0: i32, %arg1: i32) -> (i32, i32, i32) {
    %c0_i32 = arith.constant 0 : i32
    %c0_i32_0 = arith.constant 0 : i32
    %c0_i32_1 = arith.constant 0 : i32
    return %arg0, %c0_i32, %c0_i32_0 : i32, i32, i32
  }
  func.func @transform_1(%arg0: i32, %arg1: i32) -> (i32, i32, i32) {
    %c0_i32 = arith.constant 0 : i32
    %c0_i32_0 = arith.constant 0 : i32
    return %arg0, %arg1, %c0_i32 : i32, i32, i32
  }
  func.func @transform_2(%arg0: i32, %arg1: i32) -> (i32, i32, i32) {
    %c0_i32 = arith.constant 0 : i32
    %c0_i32_0 = arith.constant 0 : i32
    return %arg0, %arg1, %c0_i32 : i32, i32, i32
  }
  func.func @transform_3(%arg0: i32, %arg1: i32) -> (i32, i32) {
    %c0_i32 = arith.constant 0 : i32
    %c0_i32_0 = arith.constant 0 : i32
    %c0_i32_1 = arith.constant 0 : i32
    return %c0_i32, %c0_i32_0 : i32, i32
  }
  func.func @transform_4(%arg0: i32, %arg1: i32) -> (i32, i32) {
    %c0_i32 = arith.constant 0 : i32
    %c0_i32_0 = arith.constant 0 : i32
    %c0_i32_1 = arith.constant 0 : i32
    return %c0_i32, %c0_i32_0 : i32, i32
  }
  func.func @transform_5(%arg0: i32, %arg1: i32) -> (i32, i32) {
    %c0_i32 = arith.constant 0 : i32
    %c0_i32_0 = arith.constant 0 : i32
    %c0_i32_1 = arith.constant 0 : i32
    return %c0_i32, %c0_i32_0 : i32, i32
  }
  func.func @transform_6(%arg0: i32, %arg1: i32) -> (i32, i32) {
    %c0_i32 = arith.constant 0 : i32
    %c0_i32_0 = arith.constant 0 : i32
    %c0_i32_1 = arith.constant 0 : i32
    return %c0_i32, %c0_i32_0 : i32, i32
  }
  func.func @transform_7(%arg0: i32, %arg1: i32) -> (i32, i32, i32) {
    %c0_i32 = arith.constant 0 : i32
    %c0_i32_0 = arith.constant 0 : i32
    return %arg0, %arg1, %c0_i32 : i32, i32, i32
  }
}

module attributes {stable_mosaic.version = 11 : i64} {
  func.func @_edge_conv_kernel(%arg0: i32, %arg1: i32, %arg2: memref<1x16x128xf32, #tpu.memory_space<vmem>>, %arg3: memref<1x16x128xf32, #tpu.memory_space<vmem>>, %arg4: memref<1x16x4xi32, #tpu.memory_space<vmem>>, %arg5: memref<128x256xbf16, #tpu.memory_space<vmem>>, %arg6: memref<128x256xbf16, #tpu.memory_space<vmem>>, %arg7: memref<1x256xf32, #tpu.memory_space<vmem>>, %arg8: memref<1x256xf32, #tpu.memory_space<vmem>>, %arg9: memref<1x16x256xf32, #tpu.memory_space<vmem>>) attributes {dimension_semantics = [#tpu.dimension_semantics<parallel>, #tpu.dimension_semantics<parallel>], iteration_bounds = array<i64: 2, 1>, scalar_prefetch = 0 : i64, scratch_operands = 0 : i64, tpu.core_type = #tpu.core_type<tc>, window_params = [{transform_indices = @transform_0, window_bounds = array<i64: 1, 16, 128>}, {transform_indices = @transform_1, window_bounds = array<i64: 1, 16, 128>}, {transform_indices = @transform_2, window_bounds = array<i64: 1, 16, 4>}, {pipeline_mode = #tpu.pipeline_mode<synchronous>, transform_indices = @transform_3, window_bounds = array<i64: 128, 256>}, {pipeline_mode = #tpu.pipeline_mode<synchronous>, transform_indices = @transform_4, window_bounds = array<i64: 128, 256>}, {pipeline_mode = #tpu.pipeline_mode<synchronous>, transform_indices = @transform_5, window_bounds = array<i64: 1, 256>}, {pipeline_mode = #tpu.pipeline_mode<synchronous>, transform_indices = @transform_6, window_bounds = array<i64: 1, 256>}, {transform_indices = @transform_7, window_bounds = array<i64: 1, 16, 256>}]} {
    %c0 = arith.constant 0 : index
    %c0_0 = arith.constant 0 : index
    %c0_1 = arith.constant 0 : index
    %0 = vector.load %arg2[%c0, %c0_0, %c0_1] : memref<1x16x128xf32, #tpu.memory_space<vmem>>, vector<1x16x128xf32>
    %1 = vector.shape_cast %0 : vector<1x16x128xf32> to vector<16x128xf32>
    %2 = arith.truncf %1 : vector<16x128xf32> to vector<16x128xbf16>
    %c0_2 = arith.constant 0 : index
    %c0_3 = arith.constant 0 : index
    %c0_4 = arith.constant 0 : index
    %3 = vector.load %arg3[%c0_2, %c0_3, %c0_4] : memref<1x16x128xf32, #tpu.memory_space<vmem>>, vector<1x16x128xf32>
    %4 = vector.shape_cast %3 : vector<1x16x128xf32> to vector<16x128xf32>
    %5 = arith.truncf %4 : vector<16x128xf32> to vector<16x128xbf16>
    %c0_5 = arith.constant 0 : index
    %c0_6 = arith.constant 0 : index
    %c0_7 = arith.constant 0 : index
    %6 = vector.load %arg4[%c0_5, %c0_6, %c0_7] : memref<1x16x4xi32, #tpu.memory_space<vmem>>, vector<1x16x4xi32>
    %7 = vector.shape_cast %6 : vector<1x16x4xi32> to vector<16x4xi32>
    %c0_8 = arith.constant 0 : index
    %c0_9 = arith.constant 0 : index
    %8 = vector.load %arg5[%c0_8, %c0_9] : memref<128x256xbf16, #tpu.memory_space<vmem>>, vector<128x256xbf16>
    %c0_10 = arith.constant 0 : index
    %c0_11 = arith.constant 0 : index
    %9 = vector.load %arg6[%c0_10, %c0_11] : memref<128x256xbf16, #tpu.memory_space<vmem>>, vector<128x256xbf16>
    %c0_12 = arith.constant 0 : index
    %c0_13 = arith.constant 0 : index
    %10 = vector.load %arg7[%c0_12, %c0_13] : memref<1x256xf32, #tpu.memory_space<vmem>>, vector<1x256xf32>
    %c0_14 = arith.constant 0 : index
    %c0_15 = arith.constant 0 : index
    %11 = vector.load %arg8[%c0_14, %c0_15] : memref<1x256xf32, #tpu.memory_space<vmem>>, vector<1x256xf32>
    %12 = tpu.iota {dimensions = array<i32: 1>} : vector<16x16xi32>
    %cst = arith.constant dense<0.000000e+00> : vector<16x256xf32>
    %13 = tpu.matmul %5, %9, %cst {dimension_numbers = #tpu.dot_dimension_numbers<[1], [0], [0], [1], [0, 0, 1, 1], [], []>} : vector<16x128xbf16>, vector<128x256xbf16>, vector<16x256xf32> -> vector<16x256xf32>
    %cst_16 = arith.constant 0.000000e+00 : f32
    %14 = vector.broadcast %cst_16 : f32 to vector<16x256xf32>
    %15 = vector.extract_strided_slice %7 {offsets = [0, 0], sizes = [16, 1], strides = [1, 1]} : vector<16x4xi32> to vector<16x1xi32>
    %16 = vector.broadcast %15 : vector<16x1xi32> to vector<16x16xi32>
    %17 = arith.cmpi eq, %12, %16 : vector<16x16xi32>
    %18 = arith.extui %17 : vector<16x16xi1> to vector<16x16xi32>
    %19 = arith.sitofp %18 : vector<16x16xi32> to vector<16x16xf32>
    %20 = arith.truncf %19 : vector<16x16xf32> to vector<16x16xbf16>
    %cst_17 = arith.constant dense<0.000000e+00> : vector<16x128xf32>
    %21 = tpu.matmul %20, %2, %cst_17 {dimension_numbers = #tpu.dot_dimension_numbers<[1], [0], [0], [1], [0, 0, 1, 1], [], []>} : vector<16x16xbf16>, vector<16x128xbf16>, vector<16x128xf32> -> vector<16x128xf32>
    %22 = arith.truncf %21 : vector<16x128xf32> to vector<16x128xbf16>
    %cst_18 = arith.constant dense<0.000000e+00> : vector<16x256xf32>
    %23 = tpu.matmul %22, %8, %cst_18 {dimension_numbers = #tpu.dot_dimension_numbers<[1], [0], [0], [1], [0, 0, 1, 1], [], []>} : vector<16x128xbf16>, vector<128x256xbf16>, vector<16x256xf32> -> vector<16x256xf32>
    %24 = arith.addf %23, %13 : vector<16x256xf32>
    %25 = vector.broadcast %10 : vector<1x256xf32> to vector<16x256xf32>
    %26 = arith.mulf %24, %25 : vector<16x256xf32>
    %27 = vector.broadcast %11 : vector<1x256xf32> to vector<16x256xf32>
    %28 = arith.addf %26, %27 : vector<16x256xf32>
    %cst_19 = arith.constant 0.000000e+00 : f32
    %29 = vector.broadcast %cst_19 : f32 to vector<16x256xf32>
    %30 = arith.cmpf ogt, %28, %29 : vector<16x256xf32>
    %cst_20 = arith.constant 2.000000e-01 : f32
    %31 = vector.broadcast %cst_20 : f32 to vector<16x256xf32>
    %32 = arith.mulf %31, %28 : vector<16x256xf32>
    %33 = arith.select %30, %28, %32 : vector<16x256xi1>, vector<16x256xf32>
    %34 = arith.addf %14, %33 : vector<16x256xf32>
    %35 = vector.extract_strided_slice %7 {offsets = [0, 1], sizes = [16, 1], strides = [1, 1]} : vector<16x4xi32> to vector<16x1xi32>
    %36 = vector.broadcast %35 : vector<16x1xi32> to vector<16x16xi32>
    %37 = arith.cmpi eq, %12, %36 : vector<16x16xi32>
    %38 = arith.extui %37 : vector<16x16xi1> to vector<16x16xi32>
    %39 = arith.sitofp %38 : vector<16x16xi32> to vector<16x16xf32>
    %40 = arith.truncf %39 : vector<16x16xf32> to vector<16x16xbf16>
    %cst_21 = arith.constant dense<0.000000e+00> : vector<16x128xf32>
    %41 = tpu.matmul %40, %2, %cst_21 {dimension_numbers = #tpu.dot_dimension_numbers<[1], [0], [0], [1], [0, 0, 1, 1], [], []>} : vector<16x16xbf16>, vector<16x128xbf16>, vector<16x128xf32> -> vector<16x128xf32>
    %42 = arith.truncf %41 : vector<16x128xf32> to vector<16x128xbf16>
    %cst_22 = arith.constant dense<0.000000e+00> : vector<16x256xf32>
    %43 = tpu.matmul %42, %8, %cst_22 {dimension_numbers = #tpu.dot_dimension_numbers<[1], [0], [0], [1], [0, 0, 1, 1], [], []>} : vector<16x128xbf16>, vector<128x256xbf16>, vector<16x256xf32> -> vector<16x256xf32>
    %44 = arith.addf %43, %13 : vector<16x256xf32>
    %45 = vector.broadcast %10 : vector<1x256xf32> to vector<16x256xf32>
    %46 = arith.mulf %44, %45 : vector<16x256xf32>
    %47 = vector.broadcast %11 : vector<1x256xf32> to vector<16x256xf32>
    %48 = arith.addf %46, %47 : vector<16x256xf32>
    %cst_23 = arith.constant 0.000000e+00 : f32
    %49 = vector.broadcast %cst_23 : f32 to vector<16x256xf32>
    %50 = arith.cmpf ogt, %48, %49 : vector<16x256xf32>
    %cst_24 = arith.constant 2.000000e-01 : f32
    %51 = vector.broadcast %cst_24 : f32 to vector<16x256xf32>
    %52 = arith.mulf %51, %48 : vector<16x256xf32>
    %53 = arith.select %50, %48, %52 : vector<16x256xi1>, vector<16x256xf32>
    %54 = arith.addf %34, %53 : vector<16x256xf32>
    %55 = vector.extract_strided_slice %7 {offsets = [0, 2], sizes = [16, 1], strides = [1, 1]} : vector<16x4xi32> to vector<16x1xi32>
    %56 = vector.broadcast %55 : vector<16x1xi32> to vector<16x16xi32>
    %57 = arith.cmpi eq, %12, %56 : vector<16x16xi32>
    %58 = arith.extui %57 : vector<16x16xi1> to vector<16x16xi32>
    %59 = arith.sitofp %58 : vector<16x16xi32> to vector<16x16xf32>
    %60 = arith.truncf %59 : vector<16x16xf32> to vector<16x16xbf16>
    %cst_25 = arith.constant dense<0.000000e+00> : vector<16x128xf32>
    %61 = tpu.matmul %60, %2, %cst_25 {dimension_numbers = #tpu.dot_dimension_numbers<[1], [0], [0], [1], [0, 0, 1, 1], [], []>} : vector<16x16xbf16>, vector<16x128xbf16>, vector<16x128xf32> -> vector<16x128xf32>
    %62 = arith.truncf %61 : vector<16x128xf32> to vector<16x128xbf16>
    %cst_26 = arith.constant dense<0.000000e+00> : vector<16x256xf32>
    %63 = tpu.matmul %62, %8, %cst_26 {dimension_numbers = #tpu.dot_dimension_numbers<[1], [0], [0], [1], [0, 0, 1, 1], [], []>} : vector<16x128xbf16>, vector<128x256xbf16>, vector<16x256xf32> -> vector<16x256xf32>
    %64 = arith.addf %63, %13 : vector<16x256xf32>
    %65 = vector.broadcast %10 : vector<1x256xf32> to vector<16x256xf32>
    %66 = arith.mulf %64, %65 : vector<16x256xf32>
    %67 = vector.broadcast %11 : vector<1x256xf32> to vector<16x256xf32>
    %68 = arith.addf %66, %67 : vector<16x256xf32>
    %cst_27 = arith.constant 0.000000e+00 : f32
    %69 = vector.broadcast %cst_27 : f32 to vector<16x256xf32>
    %70 = arith.cmpf ogt, %68, %69 : vector<16x256xf32>
    %cst_28 = arith.constant 2.000000e-01 : f32
    %71 = vector.broadcast %cst_28 : f32 to vector<16x256xf32>
    %72 = arith.mulf %71, %68 : vector<16x256xf32>
    %73 = arith.select %70, %68, %72 : vector<16x256xi1>, vector<16x256xf32>
    %74 = arith.addf %54, %73 : vector<16x256xf32>
    %75 = vector.extract_strided_slice %7 {offsets = [0, 3], sizes = [16, 1], strides = [1, 1]} : vector<16x4xi32> to vector<16x1xi32>
    %76 = vector.broadcast %75 : vector<16x1xi32> to vector<16x16xi32>
    %77 = arith.cmpi eq, %12, %76 : vector<16x16xi32>
    %78 = arith.extui %77 : vector<16x16xi1> to vector<16x16xi32>
    %79 = arith.sitofp %78 : vector<16x16xi32> to vector<16x16xf32>
    %80 = arith.truncf %79 : vector<16x16xf32> to vector<16x16xbf16>
    %cst_29 = arith.constant dense<0.000000e+00> : vector<16x128xf32>
    %81 = tpu.matmul %80, %2, %cst_29 {dimension_numbers = #tpu.dot_dimension_numbers<[1], [0], [0], [1], [0, 0, 1, 1], [], []>} : vector<16x16xbf16>, vector<16x128xbf16>, vector<16x128xf32> -> vector<16x128xf32>
    %82 = arith.truncf %81 : vector<16x128xf32> to vector<16x128xbf16>
    %cst_30 = arith.constant dense<0.000000e+00> : vector<16x256xf32>
    %83 = tpu.matmul %82, %8, %cst_30 {dimension_numbers = #tpu.dot_dimension_numbers<[1], [0], [0], [1], [0, 0, 1, 1], [], []>} : vector<16x128xbf16>, vector<128x256xbf16>, vector<16x256xf32> -> vector<16x256xf32>
    %84 = arith.addf %83, %13 : vector<16x256xf32>
    %85 = vector.broadcast %10 : vector<1x256xf32> to vector<16x256xf32>
    %86 = arith.mulf %84, %85 : vector<16x256xf32>
    %87 = vector.broadcast %11 : vector<1x256xf32> to vector<16x256xf32>
    %88 = arith.addf %86, %87 : vector<16x256xf32>
    %cst_31 = arith.constant 0.000000e+00 : f32
    %89 = vector.broadcast %cst_31 : f32 to vector<16x256xf32>
    %90 = arith.cmpf ogt, %88, %89 : vector<16x256xf32>
    %cst_32 = arith.constant 2.000000e-01 : f32
    %91 = vector.broadcast %cst_32 : f32 to vector<16x256xf32>
    %92 = arith.mulf %91, %88 : vector<16x256xf32>
    %93 = arith.select %90, %88, %92 : vector<16x256xi1>, vector<16x256xf32>
    %94 = arith.addf %74, %93 : vector<16x256xf32>
    %c0_33 = arith.constant 0 : index
    %c0_34 = arith.constant 0 : index
    %c0_35 = arith.constant 0 : index
    %95 = vector.load %arg9[%c0_33, %c0_34, %c0_35] : memref<1x16x256xf32, #tpu.memory_space<vmem>>, vector<1x16x256xf32>
    %96 = vector.shape_cast %95 : vector<1x16x256xf32> to vector<16x256xf32>
    %97 = vector.shape_cast %94 : vector<16x256xf32> to vector<1x16x256xf32>
    tpu.vector_store %arg9[%c0_33, %c0_34, %c0_35], %97 {strides = array<i32>} : memref<1x16x256xf32, #tpu.memory_space<vmem>>, vector<1x16x256xf32>,
    return
  }
  func.func @transform_0(%arg0: i32, %arg1: i32) -> (i32, i32, i32) {
    %c0_i32 = arith.constant 0 : i32
    %c0_i32_0 = arith.constant 0 : i32
    %c0_i32_1 = arith.constant 0 : i32
    return %arg0, %c0_i32, %c0_i32_0 : i32, i32, i32
  }
  func.func @transform_1(%arg0: i32, %arg1: i32) -> (i32, i32, i32) {
    %c0_i32 = arith.constant 0 : i32
    %c0_i32_0 = arith.constant 0 : i32
    return %arg0, %arg1, %c0_i32 : i32, i32, i32
  }
  func.func @transform_2(%arg0: i32, %arg1: i32) -> (i32, i32, i32) {
    %c0_i32 = arith.constant 0 : i32
    %c0_i32_0 = arith.constant 0 : i32
    return %arg0, %arg1, %c0_i32 : i32, i32, i32
  }
  func.func @transform_3(%arg0: i32, %arg1: i32) -> (i32, i32) {
    %c0_i32 = arith.constant 0 : i32
    %c0_i32_0 = arith.constant 0 : i32
    %c0_i32_1 = arith.constant 0 : i32
    return %c0_i32, %c0_i32_0 : i32, i32
  }
  func.func @transform_4(%arg0: i32, %arg1: i32) -> (i32, i32) {
    %c0_i32 = arith.constant 0 : i32
    %c0_i32_0 = arith.constant 0 : i32
    %c0_i32_1 = arith.constant 0 : i32
    return %c0_i32, %c0_i32_0 : i32, i32
  }
  func.func @transform_5(%arg0: i32, %arg1: i32) -> (i32, i32) {
    %c0_i32 = arith.constant 0 : i32
    %c0_i32_0 = arith.constant 0 : i32
    %c0_i32_1 = arith.constant 0 : i32
    return %c0_i32, %c0_i32_0 : i32, i32
  }
  func.func @transform_6(%arg0: i32, %arg1: i32) -> (i32, i32) {
    %c0_i32 = arith.constant 0 : i32
    %c0_i32_0 = arith.constant 0 : i32
    %c0_i32_1 = arith.constant 0 : i32
    return %c0_i32, %c0_i32_0 : i32, i32
  }
  func.func @transform_7(%arg0: i32, %arg1: i32) -> (i32, i32, i32) {
    %c0_i32 = arith.constant 0 : i32
    %c0_i32_0 = arith.constant 0 : i32
    return %arg0, %arg1, %c0_i32 : i32, i32, i32
  }
}

module attributes {stable_mosaic.version = 11 : i64} {
  func.func @_head_kernel(%arg0: i32, %arg1: i32, %arg2: memref<1x16x128xf32, #tpu.memory_space<vmem>>, %arg3: memref<1x16x128xf32, #tpu.memory_space<vmem>>, %arg4: memref<1x16x128xf32, #tpu.memory_space<vmem>>, %arg5: memref<1x16x256xf32, #tpu.memory_space<vmem>>, %arg6: memref<640x128xbf16, #tpu.memory_space<vmem>>, %arg7: memref<1x128xf32, #tpu.memory_space<vmem>>, %arg8: memref<1x128xf32, #tpu.memory_space<vmem>>, %arg9: memref<1x128xbf16, #tpu.memory_space<vmem>>, %arg10: memref<1x1x16xf32, #tpu.memory_space<vmem>>) attributes {dimension_semantics = [#tpu.dimension_semantics<parallel>, #tpu.dimension_semantics<parallel>], iteration_bounds = array<i64: 2, 1>, scalar_prefetch = 0 : i64, scratch_operands = 0 : i64, tpu.core_type = #tpu.core_type<tc>, window_params = [{transform_indices = @transform_0, window_bounds = array<i64: 1, 16, 128>}, {transform_indices = @transform_1, window_bounds = array<i64: 1, 16, 128>}, {transform_indices = @transform_2, window_bounds = array<i64: 1, 16, 128>}, {transform_indices = @transform_3, window_bounds = array<i64: 1, 16, 256>}, {pipeline_mode = #tpu.pipeline_mode<synchronous>, transform_indices = @transform_4, window_bounds = array<i64: 640, 128>}, {pipeline_mode = #tpu.pipeline_mode<synchronous>, transform_indices = @transform_5, window_bounds = array<i64: 1, 128>}, {pipeline_mode = #tpu.pipeline_mode<synchronous>, transform_indices = @transform_6, window_bounds = array<i64: 1, 128>}, {pipeline_mode = #tpu.pipeline_mode<synchronous>, transform_indices = @transform_7, window_bounds = array<i64: 1, 128>}, {transform_indices = @transform_8, window_bounds = array<i64: 1, 1, 16>}]} {
    %c0 = arith.constant 0 : index
    %c0_0 = arith.constant 0 : index
    %c0_1 = arith.constant 0 : index
    %0 = vector.load %arg2[%c0, %c0_0, %c0_1] : memref<1x16x128xf32, #tpu.memory_space<vmem>>, vector<1x16x128xf32>
    %1 = vector.shape_cast %0 : vector<1x16x128xf32> to vector<16x128xf32>
    %2 = arith.truncf %1 : vector<16x128xf32> to vector<16x128xbf16>
    %c0_2 = arith.constant 0 : index
    %c0_3 = arith.constant 0 : index
    %3 = vector.load %arg6[%c0_2, %c0_3] : memref<640x128xbf16, #tpu.memory_space<vmem>>, vector<128x128xbf16>
    %cst = arith.constant dense<0.000000e+00> : vector<16x128xf32>
    %4 = tpu.matmul %2, %3, %cst {dimension_numbers = #tpu.dot_dimension_numbers<[1], [0], [0], [1], [0, 0, 1, 1], [], []>} : vector<16x128xbf16>, vector<128x128xbf16>, vector<16x128xf32> -> vector<16x128xf32>
    %c0_4 = arith.constant 0 : index
    %c0_5 = arith.constant 0 : index
    %c0_6 = arith.constant 0 : index
    %5 = vector.load %arg3[%c0_4, %c0_5, %c0_6] : memref<1x16x128xf32, #tpu.memory_space<vmem>>, vector<1x16x128xf32>
    %6 = vector.shape_cast %5 : vector<1x16x128xf32> to vector<16x128xf32>
    %7 = arith.truncf %6 : vector<16x128xf32> to vector<16x128xbf16>
    %c128 = arith.constant 128 : index
    %c0_7 = arith.constant 0 : index
    %8 = vector.load %arg6[%c128, %c0_7] : memref<640x128xbf16, #tpu.memory_space<vmem>>, vector<128x128xbf16>
    %cst_8 = arith.constant dense<0.000000e+00> : vector<16x128xf32>
    %9 = tpu.matmul %7, %8, %cst_8 {dimension_numbers = #tpu.dot_dimension_numbers<[1], [0], [0], [1], [0, 0, 1, 1], [], []>} : vector<16x128xbf16>, vector<128x128xbf16>, vector<16x128xf32> -> vector<16x128xf32>
    %10 = arith.addf %4, %9 : vector<16x128xf32>
    %c0_9 = arith.constant 0 : index
    %c0_10 = arith.constant 0 : index
    %c0_11 = arith.constant 0 : index
    %11 = vector.load %arg4[%c0_9, %c0_10, %c0_11] : memref<1x16x128xf32, #tpu.memory_space<vmem>>, vector<1x16x128xf32>
    %12 = vector.shape_cast %11 : vector<1x16x128xf32> to vector<16x128xf32>
    %13 = arith.truncf %12 : vector<16x128xf32> to vector<16x128xbf16>
    %c256 = arith.constant 256 : index
    %c0_12 = arith.constant 0 : index
    %14 = vector.load %arg6[%c256, %c0_12] : memref<640x128xbf16, #tpu.memory_space<vmem>>, vector<128x128xbf16>
    %cst_13 = arith.constant dense<0.000000e+00> : vector<16x128xf32>
    %15 = tpu.matmul %13, %14, %cst_13 {dimension_numbers = #tpu.dot_dimension_numbers<[1], [0], [0], [1], [0, 0, 1, 1], [], []>} : vector<16x128xbf16>, vector<128x128xbf16>, vector<16x128xf32> -> vector<16x128xf32>
    %16 = arith.addf %10, %15 : vector<16x128xf32>
    %c0_14 = arith.constant 0 : index
    %c0_15 = arith.constant 0 : index
    %c0_16 = arith.constant 0 : index
    %17 = vector.load %arg5[%c0_14, %c0_15, %c0_16] : memref<1x16x256xf32, #tpu.memory_space<vmem>>, vector<1x16x256xf32>
    %18 = vector.shape_cast %17 : vector<1x16x256xf32> to vector<16x256xf32>
    %19 = arith.truncf %18 : vector<16x256xf32> to vector<16x256xbf16>
    %c384 = arith.constant 384 : index
    %c0_17 = arith.constant 0 : index
    %20 = vector.load %arg6[%c384, %c0_17] : memref<640x128xbf16, #tpu.memory_space<vmem>>, vector<256x128xbf16>
    %cst_18 = arith.constant dense<0.000000e+00> : vector<16x128xf32>
    %21 = tpu.matmul %19, %20, %cst_18 {dimension_numbers = #tpu.dot_dimension_numbers<[1], [0], [0], [1], [0, 0, 1, 1], [], []>} : vector<16x256xbf16>, vector<256x128xbf16>, vector<16x128xf32> -> vector<16x128xf32>
    %22 = arith.addf %16, %21 : vector<16x128xf32>
    %c0_19 = arith.constant 0 : index
    %c0_20 = arith.constant 0 : index
    %23 = vector.load %arg7[%c0_19, %c0_20] : memref<1x128xf32, #tpu.memory_space<vmem>>, vector<1x128xf32>
    %24 = vector.broadcast %23 : vector<1x128xf32> to vector<16x128xf32>
    %25 = arith.mulf %22, %24 : vector<16x128xf32>
    %c0_21 = arith.constant 0 : index
    %c0_22 = arith.constant 0 : index
    %26 = vector.load %arg8[%c0_21, %c0_22] : memref<1x128xf32, #tpu.memory_space<vmem>>, vector<1x128xf32>
    %27 = vector.broadcast %26 : vector<1x128xf32> to vector<16x128xf32>
    %28 = arith.addf %25, %27 : vector<16x128xf32>
    %cst_23 = arith.constant 0.000000e+00 : f32
    %29 = vector.broadcast %cst_23 : f32 to vector<16x128xf32>
    %30 = arith.cmpf ogt, %28, %29 : vector<16x128xf32>
    %cst_24 = arith.constant 2.000000e-01 : f32
    %31 = vector.broadcast %cst_24 : f32 to vector<16x128xf32>
    %32 = arith.mulf %31, %28 : vector<16x128xf32>
    %33 = arith.select %30, %28, %32 : vector<16x128xi1>, vector<16x128xf32>
    %c0_25 = arith.constant 0 : index
    %c0_26 = arith.constant 0 : index
    %34 = vector.load %arg9[%c0_25, %c0_26] : memref<1x128xbf16, #tpu.memory_space<vmem>>, vector<1x128xbf16>
    %35 = arith.truncf %33 : vector<16x128xf32> to vector<16x128xbf16>
    %cst_27 = arith.constant dense<0.000000e+00> : vector<1x16xf32>
    %36 = tpu.matmul %34, %35, %cst_27 {dimension_numbers = #tpu.dot_dimension_numbers<[1], [1], [0], [0], [0, 0, 1, 0], [], []>} : vector<1x128xbf16>, vector<16x128xbf16>, vector<1x16xf32> -> vector<1x16xf32>
    %c0_28 = arith.constant 0 : index
    %c0_29 = arith.constant 0 : index
    %c0_30 = arith.constant 0 : index
    %37 = vector.load %arg10[%c0_28, %c0_29, %c0_30] : memref<1x1x16xf32, #tpu.memory_space<vmem>>, vector<1x1x16xf32>
    %38 = vector.shape_cast %37 : vector<1x1x16xf32> to vector<1x16xf32>
    %39 = vector.shape_cast %36 : vector<1x16xf32> to vector<1x1x16xf32>
    tpu.vector_store %arg10[%c0_28, %c0_29, %c0_30], %39 {strides = array<i32>} : memref<1x1x16xf32, #tpu.memory_space<vmem>>, vector<1x1x16xf32>,
    return
  }
  func.func @transform_0(%arg0: i32, %arg1: i32) -> (i32, i32, i32) {
    %c0_i32 = arith.constant 0 : i32
    %c0_i32_0 = arith.constant 0 : i32
    return %arg0, %arg1, %c0_i32 : i32, i32, i32
  }
  func.func @transform_1(%arg0: i32, %arg1: i32) -> (i32, i32, i32) {
    %c0_i32 = arith.constant 0 : i32
    %c0_i32_0 = arith.constant 0 : i32
    return %arg0, %arg1, %c0_i32 : i32, i32, i32
  }
  func.func @transform_2(%arg0: i32, %arg1: i32) -> (i32, i32, i32) {
    %c0_i32 = arith.constant 0 : i32
    %c0_i32_0 = arith.constant 0 : i32
    return %arg0, %arg1, %c0_i32 : i32, i32, i32
  }
  func.func @transform_3(%arg0: i32, %arg1: i32) -> (i32, i32, i32) {
    %c0_i32 = arith.constant 0 : i32
    %c0_i32_0 = arith.constant 0 : i32
    return %arg0, %arg1, %c0_i32 : i32, i32, i32
  }
  func.func @transform_4(%arg0: i32, %arg1: i32) -> (i32, i32) {
    %c0_i32 = arith.constant 0 : i32
    %c0_i32_0 = arith.constant 0 : i32
    %c0_i32_1 = arith.constant 0 : i32
    return %c0_i32, %c0_i32_0 : i32, i32
  }
  func.func @transform_5(%arg0: i32, %arg1: i32) -> (i32, i32) {
    %c0_i32 = arith.constant 0 : i32
    %c0_i32_0 = arith.constant 0 : i32
    %c0_i32_1 = arith.constant 0 : i32
    return %c0_i32, %c0_i32_0 : i32, i32
  }
  func.func @transform_6(%arg0: i32, %arg1: i32) -> (i32, i32) {
    %c0_i32 = arith.constant 0 : i32
    %c0_i32_0 = arith.constant 0 : i32
    %c0_i32_1 = arith.constant 0 : i32
    return %c0_i32, %c0_i32_0 : i32, i32
  }
  func.func @transform_7(%arg0: i32, %arg1: i32) -> (i32, i32) {
    %c0_i32 = arith.constant 0 : i32
    %c0_i32_0 = arith.constant 0 : i32
    %c0_i32_1 = arith.constant 0 : i32
    return %c0_i32, %c0_i32_0 : i32, i32
  }
  func.func @transform_8(%arg0: i32, %arg1: i32) -> (i32, i32, i32) {
    %c0_i32 = arith.constant 0 : i32
    %c0_i32_0 = arith.constant 0 : i32
    return %arg0, %c0_i32, %arg1 : i32, i32, i32
  }
}

</mosaic_0001>

<bundles_post_ra>
// kernel: dgcnn_forward.9
= control target key start
LH: loop header
LB: loop body
LE: loop exit
PB: predicated region body
PF: predicated region fallthrough
CT: control target
= control target key end

     0   :  { %s763_s9 = smov 0   ;;  %s765_s10 = smov 0   ;;  %s846_s0 = inlined_call_operand.vmem [shape: f32[2,16,128], index: 0, kind: input, shape index: {}, may-alias: {0,1}]   ;;  %s847_s1 = inlined_call_operand.vmem [shape: f32[2,16,128], index: 1, kind: input, shape index: {}, may-alias: {0,1}]   ;;  %s848_s2 = inlined_call_operand.vmem [shape: s32[2,16,4], index: 2, kind: output, shape index: {}]  }
   0x1   :  { %s767_s11 = smov 0  }
   0x2 LB: > { %s24_s12 = sadd.s32 1, %s738_s10  ;;  %p652_p0 = scmp.ge.s32.totalorder %s742_s11, 1  ;;  %s742_s11 = sphi %s767_s11, %s12_s11   ;;  %s738_s10 = sphi %s765_s10, %s850_s10   ;;  %s734_s9 = sphi %s763_s9, %s849_s9  }
   0x3   : > { %p26_p1 = scmp.ge.s32.totalorder %s24_s12, 2  ;;  %p143_p2 = scmp.lt.s32.totalorder %s742_s11, 3 }
   0x5   : > { %s852_s12 = smov (%p26_p1, %s24_s12), 0  ;;  %p144_p3 = pnand %p652_p0, %p143_p2 }
   0x6   : > { %p179_p4 = scmp.lt.s32.totalorder (!%p144_p3), %s734_s9, 1  ;;  %v744_v0 = vmov (!%p144_p3), 0.0|0.0   ;;  %vm745_vm0 = vmmov (!%p144_p3), 0   ;;  %v746_v1 = vmov (!%p144_p3), 0.0   ;;  %v747_v10 = vmov (!%p144_p3), 1.0  }
   0x7   : > { %147 = sbr.rel (%p144_p3) target bundleno = 2016 (0x7e0), region = 28  ;;  %689 = vmatprep.subr.bf16.mxu1 (!%p144_p3), %v744_v0  ;;  %682 = vmatprep.mubr.msk.f32.mxu1 (!%p144_p3), %vm745_vm0, %v746_v1  ;;  %v356_v11 = vlaneseq (!%p144_p3)  ;;  %vm364_vm1 = vcmask (!%p144_p3), 130048   ;;  %vm405_vm6 = vcmask (!%p144_p3), 7168   ;;  %vm452_vm13 = vcmask (!%p144_p3), 15368  }
   0x9   : > { %v357_v12 = vshrl.u32 (!%p144_p3), %v356_v11, 7  ;;  %v793_v25 = vand.u32 (!%p144_p3), 127, %v356_v11 }
   0xb   : > { %v358_v13 = vsub.s32 (!%p144_p3), 0, %v357_v12 }
   0xe   : > { %s854_s9 = smov (!%p179_p4, %s734_s9), 1 }
   0xf   : > { %s781_s13 = sshll.u32 %s854_s9, 4 }
  0x10   : > { %s192_s16 = scalar_lea.vmem %s847_s1, %s781_s13  ;;  %s186_s19 = scalar_lea.vmem %s846_s0, %s781_s13 }
  0x11   : > { %v205_v2 = vld [vmem:[%s192_s16] sm:$0xff]  ;;  %v206_v3 = vld [vmem:[%s192_s16 + $0x8] sm:$0xff]  ;;  %s803_s22 = scalar_lea.vmem %s848_s2, %s781_s13 }
  0x12   : > { %v685_v4 = vpack.c.bf16 %v206_v3, %v205_v2  ;;  %v282_v5 = vmul.f32 %v205_v2, %v205_v2  ;;  %v283_v6 = vmul.f32 %v206_v3, %v206_v3  ;;  %v203_v7 = vld [vmem:[%s186_s19] sm:$0xff]  ;;  %v204_v9 = vld [vmem:[%s186_s19 + $0x8] sm:$0xff] }
  0x13   : > { %675 = vmatprep.mubr.f32.mxu0 %v203_v7 }
  0x14   : > { %686 = vmatprep.subr.bf16.mxu0 %v685_v4  ;;  %v690_v8 = vpack.c.bf16 %v283_v6, %v282_v5 }
  0x15   : > { %688 = vmatpush3.bf16.xpose.msra.mxu0 %v685_v4 }
  0x16   : > { %691 = vmatpush3.bf16.xpose.msra.mxu1 %v690_v8 }
  0x1c   : > { %676 = vmatmul.mubr.f32.vlgmr.msra.gmra.mrb[0].mxu0 %v204_v9 }
  0x1d   : > { %683 = vmatmul.mubr.f32.vlgmr.msra.gmra.mrb[0].mxu1 %v747_v10 }
  0xef   : > { %v677_v14 = vpop.f32.mrb[0].mxu0 }
  0xf0   : > { %v355_v15 = vmul.f32 2.0, %v677_v14  ;;  %v273_v16 = vpop.f32.mrb[1].mxu0  ;;  %v350_v17 = vpop.f32.mrb[0].mxu1 }
  0xf1   : > { %v354_v18 = vmul.f32 2.0, %v273_v16  ;;  %v359_v19 = vrot.slane %v350_v17, %v358_v13  ;;  %v684_v20 = vpop.f32.mrb[1].mxu1 }
  0xf3   : > { %v360_v21 = vsub.f32 %v354_v18, %v359_v19  ;;  %v361_v22 = vsub.f32 %v355_v15, %v359_v19 }
  0xf5   : > { %v365_v23 = vsel %vm364_vm1, %v360_v21, -inf  ;;  %v368_v24 = vsel %vm364_vm1, %v361_v22, -inf }
  0xf6   : > { %366 = vmax.xlane.f32.xlu0 %v365_v23 }
  0xfa   : > { %369 = vmax.xlane.f32.xlu0 %v368_v24 }
 0x183   : > { %v367_v26 = vpop.xlane.xlu0 %366 }
 0x184   : > { %vm371_vm2 = vcmp.ge.f32.partialorder %v360_v21, %v367_v26 }
 0x185   : > { %v373_v27 = vsel %vm371_vm2, %v793_v25, 16 }
 0x186   : > { %v375_v28 = vsel %vm364_vm1, %v373_v27, 2147483647 }
 0x187   : > { %v370_v29 = vpop.xlane.xlu0 %369  ;;  %v377_v30 = vshra.s32 %v375_v28, 16  ;;  %v376_v36 = vand.u32 65535, %v375_v28 }
 0x188   : > { %vm372_vm3 = vcmp.ge.f32.partialorder %v361_v22, %v370_v29 }
 0x189   : > { %v374_v31 = vsel %vm372_vm3, %v793_v25, 16  ;;  %v379_v32 = vcvt.s32.f32 %v377_v30  ;;  %v378_v38 = vcvt.s32.f32 %v376_v36 }
 0x18a   : > { %v390_v33 = vsel %vm364_vm1, %v374_v31, 2147483647 }
 0x18b   : > { %380 = vmin.xlane.f32.xlu1 %v379_v32  ;;  %v392_v34 = vshra.s32 %v390_v33, 16  ;;  %v391_v39 = vand.u32 65535, %v390_v33 }
 0x18d   : > { %v394_v35 = vcvt.s32.f32 %v392_v34  ;;  %v393_v42 = vcvt.s32.f32 %v391_v39 }
 0x18f   : > { %395 = vmin.xlane.f32.xlu1 %v394_v35 }
 0x218   : > { %v381_v37 = vpop.xlane.xlu1 %380 }
 0x219   : > { %vm382_vm4 = vcmp.eq.f32.partialorder %v379_v32, %v381_v37  ;;  %v387_v44 = vcvt.f32.s32 %v381_v37 }
 0x21a   : > { %v383_v40 = vsel %vm382_vm4, %v378_v38, inf }
 0x21b   : > { %384 = vmin.xlane.f32.xlu0 %v383_v40  ;;  %v388_v46 = vshll.u32 %v387_v44, 16 }
 0x21c   : > { %v396_v41 = vpop.xlane.xlu1 %395 }
 0x21d   : > { %vm397_vm5 = vcmp.eq.f32.partialorder %v394_v35, %v396_v41  ;;  %v402_v47 = vcvt.f32.s32 %v396_v41 }
 0x21e   : > { %v398_v43 = vsel %vm397_vm5, %v393_v42, inf  ;;  %vm499_vm5 = vcmask 23568  }
 0x21f   : > { %399 = vmin.xlane.f32.xlu1 %v398_v43  ;;  %v403_v51 = vshll.u32 %v402_v47, 16 }
 0x2a8   : > { %v385_v45 = vpop.xlane.xlu0 %384 }
 0x2a9   : > { %v386_v48 = vcvt.f32.s32 %v385_v45 }
 0x2ab   : > { %v389_v49 = vadd.s32 %v388_v46, %v386_v48 }
 0x2ac   : > { %v400_v50 = vpop.xlane.xlu1 %399 }
 0x2ad   : > { %406 = vst.msk [vmem:[%s803_s22] sm:$0xff] %vm405_vm6, %v389_v49  ;;  %v401_v52 = vcvt.f32.s32 %v400_v50  ;;  %vm408_vm7 = vcmp.eq.s32.totalorder %v793_v25, %v389_v49 }
 0x2ae   : > { %v410_v53 = vsel %vm408_vm7, -3e+38, %v360_v21 }
 0x2af   : > { %v404_v54 = vadd.s32 %v403_v51, %v401_v52  ;;  %v412_v55 = vsel %vm364_vm1, %v410_v53, -inf }
 0x2b0   : > { %413 = vmax.xlane.f32.xlu0 %v412_v55 }
 0x2b1   : > { %407 = vst.msk [vmem:[%s803_s22 + $0x8] sm:$0xff] %vm405_vm6, %v404_v54  ;;  %vm409_vm8 = vcmp.eq.s32.totalorder %v793_v25, %v404_v54 }
 0x2b2   : > { %v411_v56 = vsel %vm409_vm8, -3e+38, %v361_v22 }
 0x2b3   : > { %v415_v57 = vsel %vm364_vm1, %v411_v56, -inf }
 0x2b4   : > { %416 = vmax.xlane.f32.xlu1 %v415_v57 }
 0x33d   : > { %v414_v58 = vpop.xlane.xlu0 %413 }
 0x33e   : > { %vm418_vm9 = vcmp.ge.f32.partialorder %v410_v53, %v414_v58 }
 0x33f   : > { %v420_v59 = vsel %vm418_vm9, %v793_v25, 16 }
 0x340   : > { %v422_v60 = vsel %vm364_vm1, %v420_v59, 2147483647 }
 0x341   : > { %v417_v61 = vpop.xlane.xlu1 %416  ;;  %v424_v62 = vshra.s32 %v422_v60, 16  ;;  %v423_v4 = vand.u32 65535, %v422_v60 }
 0x342   : > { %vm419_vm10 = vcmp.ge.f32.partialorder %v411_v56, %v417_v61 }
 0x343   : > { %v421_v63 = vsel %vm419_vm10, %v793_v25, 16  ;;  %v426_v0 = vcvt.s32.f32 %v424_v62  ;;  %v425_v6 = vcvt.s32.f32 %v423_v4 }
 0x344   : > { %v437_v1 = vsel %vm364_vm1, %v421_v63, 2147483647 }
 0x345   : > { %427 = vmin.xlane.f32.xlu0 %v426_v0  ;;  %v439_v2 = vshra.s32 %v437_v1, 16  ;;  %v438_v7 = vand.u32 65535, %v437_v1 }
 0x347   : > { %v441_v3 = vcvt.s32.f32 %v439_v2  ;;  %v440_v10 = vcvt.s32.f32 %v438_v7 }
 0x349   : > { %442 = vmin.xlane.f32.xlu1 %v441_v3 }
 0x3d2   : > { %v428_v5 = vpop.xlane.xlu0 %427 }
 0x3d3   : > { %vm429_vm11 = vcmp.eq.f32.partialorder %v426_v0, %v428_v5  ;;  %v434_v12 = vcvt.f32.s32 %v428_v5 }
 0x3d4   : > { %v430_v8 = vsel %vm429_vm11, %v425_v6, inf }
 0x3d5   : > { %431 = vmin.xlane.f32.xlu0 %v430_v8  ;;  %v435_v14 = vshll.u32 %v434_v12, 16 }
 0x3d6   : > { %v443_v9 = vpop.xlane.xlu1 %442 }
 0x3d7   : > { %vm444_vm12 = vcmp.eq.f32.partialorder %v441_v3, %v443_v9  ;;  %v449_v15 = vcvt.f32.s32 %v443_v9 }
 0x3d8   : > { %v445_v11 = vsel %vm444_vm12, %v440_v10, inf }
 0x3d9   : > { %446 = vmin.xlane.f32.xlu1 %v445_v11  ;;  %v450_v19 = vshll.u32 %v449_v15, 16 }
 0x462   : > { %v432_v13 = vpop.xlane.xlu0 %431 }
 0x463   : > { %v433_v16 = vcvt.f32.s32 %v432_v13 }
 0x465   : > { %v436_v17 = vadd.s32 %v435_v14, %v433_v16 }
 0x466   : > { %v447_v18 = vpop.xlane.xlu1 %446 }
 0x467   : > { %453 = vst.msk [vmem:[%s803_s22] sm:$0xff] %vm452_vm13, %v436_v17  ;;  %v448_v20 = vcvt.f32.s32 %v447_v18  ;;  %vm455_vm14 = vcmp.eq.s32.totalorder %v793_v25, %v436_v17 }
 0x468   : > { %v457_v21 = vsel %vm455_vm14, -3e+38, %v410_v53 }
 0x469   : > { %v451_v22 = vadd.s32 %v450_v19, %v448_v20  ;;  %v459_v23 = vsel %vm364_vm1, %v457_v21, -inf }
 0x46a   : > { %460 = vmax.xlane.f32.xlu0 %v459_v23 }
 0x46b   : > { %454 = vst.msk [vmem:[%s803_s22 + $0x8] sm:$0xff] %vm452_vm13, %v451_v22  ;;  %vm456_vm15 = vcmp.eq.s32.totalorder %v793_v25, %v451_v22 }
 0x46c   : > { %v458_v24 = vsel %vm456_vm15, -3e+38, %v411_v56 }
 0x46d   : > { %v462_v26 = vsel %vm364_vm1, %v458_v24, -inf }
 0x46e   : > { %463 = vmax.xlane.f32.xlu1 %v462_v26 }
 0x4f7   : > { %v461_v27 = vpop.xlane.xlu0 %460 }
 0x4f8   : > { %vm465_vm0 = vcmp.ge.f32.partialorder %v457_v21, %v461_v27 }
 0x4f9   : > { %v467_v28 = vsel %vm465_vm0, %v793_v25, 16 }
 0x4fa   : > { %v469_v29 = vsel %vm364_vm1, %v467_v28, 2147483647 }
 0x4fb   : > { %v464_v30 = vpop.xlane.xlu1 %463  ;;  %v471_v31 = vshra.s32 %v469_v29, 16  ;;  %v470_v37 = vand.u32 65535, %v469_v29 }
 0x4fc   : > { %vm466_vm2 = vcmp.ge.f32.partialorder %v458_v24, %v464_v30 }
 0x4fd   : > { %v468_v32 = vsel %vm466_vm2, %v793_v25, 16  ;;  %v473_v33 = vcvt.s32.f32 %v471_v31  ;;  %v472_v39 = vcvt.s32.f32 %v470_v37 }
 0x4fe   : > { %v484_v34 = vsel %vm364_vm1, %v468_v32, 2147483647 }
 0x4ff   : > { %474 = vmin.xlane.f32.xlu0 %v473_v33  ;;  %v486_v35 = vshra.s32 %v484_v34, 16  ;;  %v485_v40 = vand.u32 65535, %v484_v34 }
 0x501   : > { %v488_v36 = vcvt.s32.f32 %v486_v35  ;;  %v487_v43 = vcvt.s32.f32 %v485_v40 }
 0x503   : > { %489 = vmin.xlane.f32.xlu1 %v488_v36 }
 0x58c   : > { %v475_v38 = vpop.xlane.xlu0 %474 }
 0x58d   : > { %vm476_vm3 = vcmp.eq.f32.partialorder %v473_v33, %v475_v38  ;;  %v481_v45 = vcvt.f32.s32 %v475_v38 }
 0x58e   : > { %v477_v41 = vsel %vm476_vm3, %v472_v39, inf }
 0x58f   : > { %478 = vmin.xlane.f32.xlu0 %v477_v41  ;;  %v482_v47 = vshll.u32 %v481_v45, 16 }
 0x590   : > { %v490_v42 = vpop.xlane.xlu1 %489 }
 0x591   : > { %vm491_vm4 = vcmp.eq.f32.partialorder %v488_v36, %v490_v42  ;;  %v496_v48 = vcvt.f32.s32 %v490_v42 }
 0x592   : > { %v492_v44 = vsel %vm491_vm4, %v487_v43, inf }
 0x593   : > { %493 = vmin.xlane.f32.xlu1 %v492_v44  ;;  %v497_v52 = vshll.u32 %v496_v48, 16 }
 0x61c   : > { %v479_v46 = vpop.xlane.xlu0 %478 }
 0x61d   : > { %v480_v49 = vcvt.f32.s32 %v479_v46 }
 0x61f   : > { %v483_v50 = vadd.s32 %v482_v47, %v480_v49 }
 0x620   : > { %v494_v51 = vpop.xlane.xlu1 %493 }
 0x621   : > { %500 = vst.msk [vmem:[%s803_s22] sm:$0xff] %vm499_vm5, %v483_v50  ;;  %v495_v53 = vcvt.f32.s32 %v494_v51  ;;  %vm502_vm6 = vcmp.eq.s32.totalorder %v793_v25, %v483_v50 }
 0x622   : > { %v504_v54 = vsel %vm502_vm6, -3e+38, %v457_v21 }
 0x623   : > { %v498_v55 = vadd.s32 %v497_v52, %v495_v53  ;;  %v506_v56 = vsel %vm364_vm1, %v504_v54, -inf }
 0x624   : > { %507 = vmax.xlane.f32.xlu0 %v506_v56 }
 0x625   : > { %501 = vst.msk [vmem:[%s803_s22 + $0x8] sm:$0xff] %vm499_vm5, %v498_v55  ;;  %vm503_vm7 = vcmp.eq.s32.totalorder %v793_v25, %v498_v55 }
 0x626   : > { %v505_v57 = vsel %vm503_vm7, -3e+38, %v458_v24 }
 0x627   : > { %v509_v58 = vsel %vm364_vm1, %v505_v57, -inf }
 0x628   : > { %510 = vmax.xlane.f32.xlu1 %v509_v58 }
 0x6b1   : > { %v508_v59 = vpop.xlane.xlu0 %507 }
 0x6b2   : > { %vm512_vm8 = vcmp.ge.f32.partialorder %v504_v54, %v508_v59 }
 0x6b3   : > { %v514_v60 = vsel %vm512_vm8, %v793_v25, 16 }
 0x6b4   : > { %v516_v61 = vsel %vm364_vm1, %v514_v60, 2147483647 }
 0x6b5   : > { %v511_v62 = vpop.xlane.xlu1 %510  ;;  %v518_v63 = vshra.s32 %v516_v61, 16  ;;  %v517_v5 = vand.u32 65535, %v516_v61 }
 0x6b6   : > { %vm513_vm9 = vcmp.ge.f32.partialorder %v505_v57, %v511_v62 }
 0x6b7   : > { %v515_v0 = vsel %vm513_vm9, %v793_v25, 16  ;;  %v520_v1 = vcvt.s32.f32 %v518_v63  ;;  %v519_v7 = vcvt.s32.f32 %v517_v5 }
 0x6b8   : > { %v531_v2 = vsel %vm364_vm1, %v515_v0, 2147483647  ;;  %vm546_vm1 = vcmask 31768  }
 0x6b9   : > { %521 = vmin.xlane.f32.xlu0 %v520_v1  ;;  %v533_v3 = vshra.s32 %v531_v2, 16  ;;  %v532_v8 = vand.u32 65535, %v531_v2 }
 0x6bb   : > { %v535_v4 = vcvt.s32.f32 %v533_v3  ;;  %v534_v11 = vcvt.s32.f32 %v532_v8 }
 0x6bd   : > { %536 = vmin.xlane.f32.xlu1 %v535_v4 }
 0x746   : > { %v522_v6 = vpop.xlane.xlu0 %521 }
 0x747   : > { %vm523_vm10 = vcmp.eq.f32.partialorder %v520_v1, %v522_v6  ;;  %v528_v12 = vcvt.f32.s32 %v522_v6 }
 0x748   : > { %v524_v9 = vsel %vm523_vm10, %v519_v7, inf }
 0x749   : > { %525 = vmin.xlane.f32.xlu0 %v524_v9  ;;  %v529_v14 = vshll.u32 %v528_v12, 16 }
 0x74a   : > { %v537_v10 = vpop.xlane.xlu1 %536 }
 0x74b   : > { %vm538_vm11 = vcmp.eq.f32.partialorder %v535_v4, %v537_v10  ;;  %v543_v15 = vcvt.f32.s32 %v537_v10 }
 0x74c   : > { %v539_v25 = vsel %vm538_vm11, %v534_v11, inf }
 0x74d   : > { %540 = vmin.xlane.f32.xlu1 %v539_v25  ;;  %v544_v19 = vshll.u32 %v543_v15, 16 }
 0x7d6   : > { %v526_v13 = vpop.xlane.xlu0 %525 }
 0x7d7   : > { %v527_v16 = vcvt.f32.s32 %v526_v13 }
 0x7d9   : > { %v530_v17 = vadd.s32 %v529_v14, %v527_v16 }
 0x7da   : > { %v541_v18 = vpop.xlane.xlu1 %540 }
 0x7db   : > { %547 = vst.msk [vmem:[%s803_s22] sm:$0xff] %vm546_vm1, %v530_v17  ;;  %v542_v20 = vcvt.f32.s32 %v541_v18 }
 0x7dd   : > { %v545_v21 = vadd.s32 %v544_v19, %v542_v20 }
 0x7df   : > { %548 = vst.msk [vmem:[%s803_s22 + $0x8] sm:$0xff] %vm546_vm1, %v545_v21 }
 0x7e0 PF: > { %s12_s11 = sadd.s32 1, %s742_s11   ;;  %s849_s9 = smov %s738_s10 }
 0x7e1   : > { %p9_p5 = scmp.ge.s32.totalorder %s12_s11, 4   ;;  %s850_s10 = smov %s852_s12 }
 0x7e3   :  { %11 = sbr.rel (!%p9_p5) target bundleno = 2 (0x2), region = 61 }

// kernel: dgcnn_forward.10
= control target key start
LH: loop header
LB: loop body
LE: loop exit
PB: predicated region body
PF: predicated region fallthrough
CT: control target
= control target key end

     0   :  { %s1480_s24 = smov 0   ;;  %s1482_s25 = smov 0   ;;  %s1729_s0 = inlined_call_operand.vmem [shape: f32[2,16,128], index: 0, kind: input, shape index: {}, may-alias: {0,1}]   ;;  %s1730_s1 = inlined_call_operand.vmem [shape: f32[2,16,128], index: 1, kind: input, shape index: {}, may-alias: {0,1}]   ;;  %s1731_s2 = inlined_call_operand.vmem [shape: s32[2,16,4], index: 2, kind: input, shape index: {}]   ;;  %s1732_s3 = inlined_call_operand.vmem [shape: bf16[128,128], index: 3, kind: input, shape index: {}]   ;;  %s1733_s4 = inlined_call_operand.vmem [shape: bf16[128,128], index: 4, kind: input, shape index: {}]   ;;  %s1734_s5 = inlined_call_operand.vmem [shape: f32[1,128], index: 5, kind: input, shape index: {}]   ;;  %s1735_s6 = inlined_call_operand.vmem [shape: f32[1,128], index: 6, kind: input, shape index: {}]   ;;  %s1736_s7 = inlined_call_operand.vmem [shape: f32[2,16,128], index: 7, kind: output, shape index: {}]  }
   0x1   :  { %s1484_s26 = smov 0  }
   0x2 LB: > { %s29_s27 = sadd.s32 1, %s1428_s25  ;;  %p1136_p0 = scmp.ge.s32.totalorder %s1432_s26, 1  ;;  %s1432_s26 = sphi %s1484_s26, %s17_s26   ;;  %s1428_s25 = sphi %s1482_s25, %s1738_s25   ;;  %s1424_s24 = sphi %s1480_s24, %s1737_s24  }
   0x3   : > { %p31_p1 = scmp.ge.s32.totalorder %s29_s27, 2  ;;  %p285_p2 = scmp.lt.s32.totalorder %s1432_s26, 3 }
   0x5   : > { %s1740_s27 = smov (%p31_p1, %s29_s27), 0  ;;  %p286_p3 = pnand %p1136_p0, %p285_p2 }
   0x6   : > { %p339_p4 = scmp.lt.s32.totalorder (!%p286_p3), %s1424_s24, 1  ;;  %v1394_v0 = vld [vmem:[%s1733_s4] sm:$0xff] (!%p286_p3)   ;;  %v1434_v1 = vmov (!%p286_p3), 0   ;;  %v1435_v2 = vmov (!%p286_p3), 1   ;;  %v1436_v3 = vmov (!%p286_p3), 0.0   ;;  %v1395_v4 = vld [vmem:[%s1733_s4 + $0x8] sm:$0xff] (!%p286_p3)   ;;  %v417_v28 = vlaneseq (!%p286_p3) }
   0x7   : > { %289 = sbr.rel (%p286_p3) target bundleno = 836 (0x344), region = 48  ;;  %1388 = vset.pattern.permute.xlu0 (!%p286_p3), %v1434_v1  ;;  %1389 = vset.pattern.permute.xlu1 (!%p286_p3), %v1435_v2  ;;  %vm1437_vm0 = vmmov (!%p286_p3), 0   ;;  %v1396_v6 = vld [vmem:[%s1733_s4 + $0x10] sm:$0xff] (!%p286_p3)   ;;  %v1397_v8 = vld [vmem:[%s1733_s4 + $0x18] sm:$0xff] (!%p286_p3)   ;;  %v1438_v9 = vmov (!%p286_p3), 2   ;;  %v1398_v10 = vld [vmem:[%s1733_s4 + $0x20] sm:$0xff] (!%p286_p3)  }
   0x8   : > { %1234 = vmatprep.subr.bf16.mxu0 (!%p286_p3), %v1436_v3  ;;  %1260 = vmatprep.subr.bf16.mxu1 (!%p286_p3), %v1436_v3  ;;  %v1399_v11 = vld [vmem:[%s1733_s4 + $0x28] sm:$0xff] (!%p286_p3)   ;;  %v1400_v12 = vld [vmem:[%s1733_s4 + $0x30] sm:$0xff] (!%p286_p3)   ;;  %v1401_v13 = vld [vmem:[%s1733_s4 + $0x38] sm:$0xff] (!%p286_p3)   ;;  %v1439_v20 = vmov (!%p286_p3), 3   ;;  %v1605_v29 = vand.u32 (!%p286_p3), 127, %v417_v28  ;;  %vm521_vm3 = vcmask (!%p286_p3), 130048  }
   0x9   : > { %1235 = vmatpush3.bf16.msra.mxu0 (!%p286_p3), %v1394_v0  ;;  %1250 = vmatprep.mubr.msk.bf16.mxu0 (!%p286_p3), %vm1437_vm0, %v1436_v3  ;;  %v1552_v18 = vld [vmem:[%s1732_s3] sm:$0xff] (!%p286_p3)   ;;  %v1561_v22 = vld [vmem:[%s1732_s3 + $0x8] sm:$0xff] (!%p286_p3)   ;;  %v1572_v23 = vld [vmem:[%s1732_s3 + $0x10] sm:$0xff] (!%p286_p3)  }
   0xa   : > { %1236 = vmatprep.subr.bf16.mxu0 (!%p286_p3), %v1436_v3  ;;  %1276 = vmatprep.mubr.msk.bf16.mxu1 (!%p286_p3), %vm1437_vm0, %v1436_v3  ;;  %v1579_v24 = vld [vmem:[%s1732_s3 + $0x18] sm:$0xff] (!%p286_p3)   ;;  %v1587_v25 = vld [vmem:[%s1732_s3 + $0x20] sm:$0xff] (!%p286_p3)   ;;  %v1594_v26 = vld [vmem:[%s1732_s3 + $0x28] sm:$0xff] (!%p286_p3)  }
   0xb   : > { %1261 = vmatpush3.bf16.msra.mxu1 (!%p286_p3), %v1552_v18  ;;  %v1600_v27 = vld [vmem:[%s1732_s3 + $0x30] sm:$0xff] (!%p286_p3)   ;;  %v1649_v45 = vld [vmem:[%s1732_s3 + $0x38] sm:$0xff] (!%p286_p3)  }
   0xc   : > { %1262 = vmatprep.subr.bf16.mxu1 (!%p286_p3), %v1436_v3 }
   0xd   : > { %1237 = vmatpush3.bf16.msra.mxu0 (!%p286_p3), %v1395_v4 }
   0xe   : > { %s1742_s24 = smov (!%p339_p4, %s1424_s24), 1  ;;  %1238 = vmatprep.subr.bf16.mxu0 %v1436_v3 }
   0xf   : > { %s1503_s30 = sshll.u32 %s1742_s24, 4  ;;  %1263 = vmatpush3.bf16.msra.mxu1 %v1561_v22 }
  0x10   : > { %s362_s12 = scalar_lea.vmem %s1731_s2, %s1503_s30  ;;  %s352_s28 = scalar_lea.vmem %s1730_s1, %s1503_s30  ;;  %1264 = vmatprep.subr.bf16.mxu1 %v1436_v3 }
  0x11   : > { %v381_v5 = vld [vmem:[%s362_s12] sm:$0xff]  ;;  %v382_v7 = vld [vmem:[%s362_s12 + $0x8] sm:$0xff]  ;;  %1239 = vmatpush3.bf16.msra.mxu0 %v1396_v6  ;;  %s343_s9 = scalar_lea.vmem %s1729_s0, %s1503_s30  ;;  %s372_s15 = scalar_lea.vmem %s1736_s7, %s1503_s30 }
  0x12   : > { %509 = vperm.xlu0 %1388, %v381_v5   ;;  %681 = vperm.xlu1 %1389, %v381_v5   ;;  %v378_v14 = vld [vmem:[%s352_s28] sm:$0xff]  ;;  %v379_v15 = vld [vmem:[%s352_s28 + $0x8] sm:$0xff] }
  0x13   : > { %1240 = vmatprep.subr.bf16.mxu0 %v1436_v3  ;;  %v375_v16 = vld [vmem:[%s343_s9] sm:$0xff]  ;;  %v376_v17 = vld [vmem:[%s343_s9 + $0x8] sm:$0xff]  ;;  %v380_v19 = vpack.c.bf16 %v379_v15, %v378_v14  ;;  %1265 = vmatpush3.bf16.msra.mxu1 %v1572_v23 }
  0x14   : > { %v1554_v21 = vpack.c.bf16 %v376_v17, %v375_v16  ;;  %1266 = vmatprep.subr.bf16.mxu1 %v1436_v3 }
  0x15   : > { %1241 = vmatpush3.bf16.msra.mxu0 %v1397_v8 }
  0x16   : > { %512 = vperm.xlu0 %1388, %v382_v7   ;;  %684 = vperm.xlu1 %1389, %v382_v7  }
  0x17   : > { %1242 = vmatprep.subr.bf16.mxu0 %v1436_v3  ;;  %1267 = vmatpush3.bf16.msra.mxu1 %v1579_v24 }
  0x18   : > { %1268 = vmatprep.subr.bf16.mxu1 %v1436_v3 }
  0x19   : > { %1243 = vmatpush3.bf16.msra.mxu0 %v1398_v10 }
  0x1a   : > { %1391 = vset.pattern.permute.xlu1 %v1438_v9  ;;  %1390 = vset.pattern.permute.xlu0 %v1438_v9 }
  0x1b   : > { %795 = vperm.xlu1 %1391, %v382_v7   ;;  %792 = vperm.xlu0 %1390, %v381_v5  }
  0x1c   : > { %1244 = vmatprep.subr.bf16.mxu0 %v1436_v3  ;;  %1269 = vmatpush3.bf16.msra.mxu1 %v1587_v25 }
  0x1d   : > { %1245 = vmatpush3.bf16.msra.mxu0 %v1399_v11  ;;  %1270 = vmatprep.subr.bf16.mxu1 %v1436_v3 }
  0x1e   : > { %1246 = vmatprep.subr.bf16.mxu0 %v1436_v3 }
  0x1f   : > { %1392 = vset.pattern.permute.xlu1 %v1439_v20  ;;  %1393 = vset.pattern.permute.xlu0 %v1439_v20 }
  0x20   : > { %903 = vperm.xlu1 %1392, %v381_v5   ;;  %906 = vperm.xlu0 %1393, %v382_v7  }
  0x21   : > { %1247 = vmatpush3.bf16.msra.mxu0 %v1400_v12  ;;  %1271 = vmatpush3.bf16.msra.mxu1 %v1594_v26 }
  0x22   : > { %1248 = vmatprep.subr.bf16.mxu0 %v1436_v3  ;;  %1272 = vmatprep.subr.bf16.mxu1 %v1436_v3 }
  0x25   : > { %1249 = vmatpush3.bf16.msra.mxu0 %v1401_v13  ;;  %1273 = vmatpush3.bf16.msra.mxu1 %v1600_v27 }
  0x26   : > { %1254 = vmatprep.subr.bf16.mxu0 %v1436_v3  ;;  %1274 = vmatprep.subr.bf16.mxu1 %v1436_v3 }
  0x28   : > { %1251 = vmatmul.mubr.bf16.vlgmr.msra.gmra.mrb[0].mxu0 %v380_v19 }
  0x29   : > { %1255 = vmatpush3.bf16.msra.mxu0 %v1554_v21  ;;  %1256 = vmatprep.mubr.msk.bf16.mxu0 %vm1437_vm0, %v1436_v3 }
  0x2a   : > { %1280 = vmatprep.subr.bf16.mxu0 %v1436_v3  ;;  %1275 = vmatpush3.bf16.msra.mxu1 %v1649_v45 }
  0x2b   : > { %1286 = vmatprep.subr.bf16.mxu1 %v1436_v3 }
  0x91   : > { %v510_v30 = vpop.permute.xlu0 %509  ;;  %v682_v31 = vpop.permute.xlu1 %681 }
  0x92   : > { %vm514_vm1 = vcmp.eq.s32.totalorder %v1605_v29, %v510_v30  ;;  %vm686_vm4 = vcmp.eq.s32.totalorder %v1605_v29, %v682_v31 }
  0x93   : > { %v1153_v33 = vsel %vm514_vm1, 1.0, %v1436_v3  ;;  %v1166_v37 = vsel %vm686_vm4, 1.0, %v1436_v3 }
  0x95   : > { %v513_v32 = vpop.permute.xlu0 %512  ;;  %v685_v35 = vpop.permute.xlu1 %684 }
  0x96   : > { %vm515_vm2 = vcmp.eq.s32.totalorder %v1605_v29, %v513_v32  ;;  %vm687_vm5 = vcmp.eq.s32.totalorder %v1605_v29, %v685_v35 }
  0x97   : > { %v1154_v34 = vsel %vm515_vm2, 1.0, %v1436_v3  ;;  %v1167_v38 = vsel %vm687_vm5, 1.0, %v1436_v3 }
  0x98   : > { %v520_v36 = vpack.c.bf16 %v1154_v34, %v1153_v33  ;;  %v692_v41 = vpack.c.bf16 %v1167_v38, %v1166_v37 }
  0x9a   : > { %1257 = vmatmul.mubr.msk.bf16.vlgmr.msra.gmra.mrb[4].mxu0 %vm521_vm3, %v520_v36  ;;  %v796_v39 = vpop.permute.xlu1 %795  ;;  %v793_v40 = vpop.permute.xlu0 %792 }
  0x9b   : > { %1281 = vmatpush3.bf16.msra.mxu0 %v1554_v21  ;;  %1282 = vmatprep.mubr.msk.bf16.mxu0 %vm1437_vm0, %v1436_v3  ;;  %vm798_vm6 = vcmp.eq.s32.totalorder %v1605_v29, %v796_v39  ;;  %vm797_vm7 = vcmp.eq.s32.totalorder %v1605_v29, %v793_v40 }
  0x9c   : > { %1306 = vmatprep.subr.bf16.mxu0 %v1436_v3  ;;  %v1170_v42 = vsel %vm798_vm6, 1.0, %v1436_v3  ;;  %v1169_v43 = vsel %vm797_vm7, 1.0, %v1436_v3 }
  0x9d   : > { %v803_v44 = vpack.c.bf16 %v1170_v42, %v1169_v43 }
  0x9f   : > { %v904_v60 = vpop.permute.xlu1 %903  ;;  %v907_v62 = vpop.permute.xlu0 %906 }
  0xa0   : > { %vm908_vm8 = vcmp.eq.s32.totalorder %v1605_v29, %v904_v60  ;;  %vm909_vm9 = vcmp.eq.s32.totalorder %v1605_v29, %v907_v62 }
  0xa1   : > { %v1172_v4 = vsel %vm908_vm8, 1.0, %v1436_v3  ;;  %v1173_v5 = vsel %vm909_vm9, 1.0, %v1436_v3 }
  0xa2   : > { %1283 = vmatmul.mubr.msk.bf16.vlgmr.msra.gmra.mrb[8].mxu0 %vm521_vm3, %v692_v41  ;;  %v914_v6 = vpack.c.bf16 %v1173_v5, %v1172_v4 }
  0xa3   : > { %1307 = vmatpush3.bf16.msra.mxu0 %v1554_v21  ;;  %1308 = vmatprep.mubr.msk.bf16.mxu0 %vm1437_vm0, %v1436_v3 }
  0xa4   : > { %1312 = vmatprep.subr.bf16.mxu0 %v1436_v3 }
  0xaa   : > { %1309 = vmatmul.mubr.msk.bf16.vlgmr.msra.gmra.mrb[12].mxu0 %vm521_vm3, %v803_v44 }
  0xab   : > { %1313 = vmatpush3.bf16.msra.mxu0 %v1552_v18  ;;  %1328 = vmatprep.mubr.msk.bf16.mxu0 %vm1437_vm0, %v1436_v3 }
  0xac   : > { %1314 = vmatprep.subr.bf16.mxu0 %v1436_v3 }
  0xaf   : > { %1315 = vmatpush3.bf16.msra.mxu0 %v1561_v22 }
  0xb0   : > { %1316 = vmatprep.subr.bf16.mxu0 %v1436_v3 }
  0xb3   : > { %1317 = vmatpush3.bf16.msra.mxu0 %v1572_v23 }
  0xb4   : > { %1318 = vmatprep.subr.bf16.mxu0 %v1436_v3 }
  0xb7   : > { %1319 = vmatpush3.bf16.msra.mxu0 %v1579_v24 }
  0xb8   : > { %1320 = vmatprep.subr.bf16.mxu0 %v1436_v3 }
  0xbb   : > { %1321 = vmatpush3.bf16.msra.mxu0 %v1587_v25 }
  0xbc   : > { %1322 = vmatprep.subr.bf16.mxu0 %v1436_v3 }
  0xbf   : > { %1323 = vmatpush3.bf16.msra.mxu0 %v1594_v26 }
  0xc0   : > { %1324 = vmatprep.subr.bf16.mxu0 %v1436_v3 }
  0xc3   : > { %1325 = vmatpush3.bf16.msra.mxu0 %v1600_v27 }
  0xc4   : > { %1326 = vmatprep.subr.bf16.mxu0 %v1436_v3 }
  0xc7   : > { %1327 = vmatpush3.bf16.msra.mxu0 %v1649_v45 }
  0xc8   : > { %1332 = vmatprep.subr.bf16.mxu0 %v1436_v3 }
  0xfb   : > { %v1655_v46 = vpop.f32.mrb[0].mxu0 }
  0xfc   : > { %v1252_v47 = vpop.f32.mrb[1].mxu0 }
  0xfd   : > { %v1657_v48 = vpop.f32.mrb[2].mxu0 }
  0xfe   : > { %v1253_v49 = vpop.f32.mrb[3].mxu0 }
 0x16d   : > { %v559_v50 = vpop.f32.mrb[4].mxu0 }
 0x16e   : > { %v1258_v51 = vpop.f32.mrb[5].mxu0 }
 0x16f   : > { %v562_v52 = vpop.f32.mrb[6].mxu0 }
 0x170   : > { %v566_v53 = vpack.c.bf16 %v562_v52, %v559_v50  ;;  %v1259_v54 = vpop.f32.mrb[7].mxu0 }
 0x172   : > { %1277 = vmatmul.mubr.bf16.vlgmr.msra.gmra.mrb[0].mxu1 %v566_v53 }
 0x173   : > { %1287 = vmatpush3.bf16.msra.mxu1 %v1552_v18  ;;  %1302 = vmatprep.mubr.msk.bf16.mxu1 %vm1437_vm0, %v1436_v3 }
 0x174   : > { %1288 = vmatprep.subr.bf16.mxu1 %v1436_v3 }
 0x175   : > { %v730_v55 = vpop.f32.mrb[8].mxu0 }
 0x176   : > { %v1284_v56 = vpop.f32.mrb[9].mxu0 }
 0x177   : > { %1289 = vmatpush3.bf16.msra.mxu1 %v1561_v22  ;;  %v733_v57 = vpop.f32.mrb[10].mxu0 }
 0x178   : > { %v737_v58 = vpack.c.bf16 %v733_v57, %v730_v55  ;;  %v1285_v59 = vpop.f32.mrb[11].mxu0  ;;  %1290 = vmatprep.subr.bf16.mxu1 %v1436_v3 }
 0x17b   : > { %1291 = vmatpush3.bf16.msra.mxu1 %v1572_v23 }
 0x17c   : > { %1292 = vmatprep.subr.bf16.mxu1 %v1436_v3 }
 0x17d   : > { %v841_v61 = vpop.f32.mrb[12].mxu0 }
 0x17e   : > { %v1310_v63 = vpop.f32.mrb[13].mxu0 }
 0x17f   : > { %1293 = vmatpush3.bf16.msra.mxu1 %v1579_v24  ;;  %v844_v0 = vpop.f32.mrb[14].mxu0 }
 0x180   : > { %v848_v1 = vpack.c.bf16 %v844_v0, %v841_v61  ;;  %v1311_v2 = vpop.f32.mrb[15].mxu0  ;;  %1294 = vmatprep.subr.bf16.mxu1 %v1436_v3 }
 0x182   : > { %1329 = vmatmul.mubr.bf16.vlgmr.msra.gmra.mrb[16].mxu0 %v848_v1 }
 0x183   : > { %1295 = vmatpush3.bf16.msra.mxu1 %v1587_v25  ;;  %1333 = vmatpush3.bf16.msra.mxu0 %v1554_v21 }
 0x184   : > { %1296 = vmatprep.subr.bf16.mxu1 %v1436_v3  ;;  %1334 = vmatprep.mubr.msk.bf16.mxu0 %vm1437_vm0, %v1436_v3 }
 0x187   : > { %1297 = vmatpush3.bf16.msra.mxu1 %v1594_v26 }
 0x188   : > { %1298 = vmatprep.subr.bf16.mxu1 %v1436_v3 }
 0x18a   : > { %1335 = vmatmul.mubr.msk.bf16.vlgmr.msra.gmra.mrb[20].mxu0 %vm521_vm3, %v914_v6 }
 0x18b   : > { %1299 = vmatpush3.bf16.msra.mxu1 %v1600_v27 }
 0x18c   : > { %1300 = vmatprep.subr.bf16.mxu1 %v1436_v3 }
 0x18f   : > { %1301 = vmatpush3.bf16.msra.mxu1 %v1649_v45 }
 0x190   : > { %1338 = vmatprep.subr.bf16.mxu1 %v1436_v3 }
 0x192   : > { %1303 = vmatmul.mubr.bf16.vlgmr.msra.gmra.mrb[4].mxu1 %v737_v58 }
 0x193   : > { %1339 = vmatpush3.bf16.msra.mxu1 %v1552_v18  ;;  %1354 = vmatprep.mubr.msk.bf16.mxu1 %vm1437_vm0, %v1436_v3 }
 0x194   : > { %1340 = vmatprep.subr.bf16.mxu1 %v1436_v3 }
 0x197   : > { %1341 = vmatpush3.bf16.msra.mxu1 %v1561_v22 }
 0x198   : > { %1342 = vmatprep.subr.bf16.mxu1 %v1436_v3 }
 0x19b   : > { %1343 = vmatpush3.bf16.msra.mxu1 %v1572_v23 }
 0x19c   : > { %1344 = vmatprep.subr.bf16.mxu1 %v1436_v3 }
 0x19f   : > { %1345 = vmatpush3.bf16.msra.mxu1 %v1579_v24 }
 0x1a0   : > { %1346 = vmatprep.subr.bf16.mxu1 %v1436_v3 }
 0x1a3   : > { %1347 = vmatpush3.bf16.msra.mxu1 %v1587_v25  ;;  %v1165_v25 = vld [vmem:[%s1735_s6] ss:$0 sm:$0xff] }
 0x1a4   : > { %1348 = vmatprep.subr.bf16.mxu1 %v1436_v3 }
 0x1a7   : > { %1349 = vmatpush3.bf16.msra.mxu1 %v1594_v26 }
 0x1a8   : > { %1350 = vmatprep.subr.bf16.mxu1 %v1436_v3 }
 0x1ab   : > { %1351 = vmatpush3.bf16.msra.mxu1 %v1600_v27 }
 0x1ac   : > { %1352 = vmatprep.subr.bf16.mxu1 %v1436_v3  ;;  %v1164_v3 = vld [vmem:[%s1734_s5] ss:$0 sm:$0xff] }
 0x1af   : > { %1353 = vmatpush3.bf16.msra.mxu1 %v1649_v45 }
 0x245   : > { %v649_v7 = vpop.f32.mrb[0].mxu1 }
 0x246   : > { %v650_v8 = vadd.f32 %v649_v7, %v1655_v46  ;;  %v1278_v9 = vpop.f32.mrb[1].mxu1 }
 0x247   : > { %v652_v10 = vpop.f32.mrb[2].mxu1 }
 0x248   : > { %v653_v11 = vadd.f32 %v652_v10, %v1657_v48  ;;  %v1279_v12 = vpop.f32.mrb[3].mxu1  ;;  %v662_v24 = vmul.f32 %v1164_v3, %v650_v8 }
 0x24a   : > { %v663_v26 = vmul.f32 %v1164_v3, %v653_v11  ;;  %v670_v28 = vadd.f32 %v1165_v25, %v662_v24 }
 0x24c   : > { %v671_v33 = vadd.f32 %v1165_v25, %v663_v26  ;;  %v674_v39 = vmul.f32 0.2, %v670_v28  ;;  %vm672_vm10 = vcmp.gt.f32.partialorder %v670_v28, 0.0 }
 0x24e   : > { %v675_v43 = vmul.f32 0.2, %v671_v33  ;;  %v676_v49 = vsel %vm672_vm10, %v670_v28, %v674_v39  ;;  %vm673_vm12 = vcmp.gt.f32.partialorder %v671_v33, 0.0 }
 0x250   : > { %v677_v54 = vsel %vm673_vm12, %v671_v33, %v675_v43 }
 0x255   : > { %v883_v13 = vpop.f32.mrb[16].mxu0 }
 0x256   : > { %v884_v14 = vadd.f32 %v883_v13, %v1655_v46  ;;  %v1330_v15 = vpop.f32.mrb[17].mxu0 }
 0x257   : > { %v886_v16 = vpop.f32.mrb[18].mxu0 }
 0x258   : > { %v887_v17 = vadd.f32 %v886_v16, %v1657_v48  ;;  %v1331_v18 = vpop.f32.mrb[19].mxu0  ;;  %v890_v27 = vmul.f32 %v1164_v3, %v884_v14 }
 0x25a   : > { %v891_v30 = vmul.f32 %v1164_v3, %v887_v17  ;;  %v892_v35 = vadd.f32 %v1165_v25, %v890_v27 }
 0x25c   : > { %v893_v40 = vadd.f32 %v1165_v25, %v891_v30  ;;  %v896_v44 = vmul.f32 0.2, %v892_v35  ;;  %vm894_vm13 = vcmp.gt.f32.partialorder %v892_v35, 0.0 }
 0x25d   : > { %v952_v19 = vpop.f32.mrb[20].mxu0 }
 0x25e   : > { %v1336_v20 = vpop.f32.mrb[21].mxu0  ;;  %v897_v50 = vmul.f32 0.2, %v893_v40  ;;  %vm895_vm15 = vcmp.gt.f32.partialorder %v893_v40, 0.0  ;;  %v898_v55 = vsel %vm894_vm13, %v892_v35, %v896_v44 }
 0x25f   : > { %v955_v21 = vpop.f32.mrb[22].mxu0 }
 0x260   : > { %v959_v22 = vpack.c.bf16 %v955_v21, %v952_v19  ;;  %v1337_v23 = vpop.f32.mrb[23].mxu0  ;;  %v899_v59 = vsel %vm895_vm15, %v893_v40, %v897_v50 }
 0x262   : > { %1355 = vmatmul.mubr.bf16.vlgmr.msra.gmra.mrb[8].mxu1 %v959_v22 }
 0x265   : > { %v772_v29 = vpop.f32.mrb[4].mxu1 }
 0x266   : > { %v773_v31 = vadd.f32 %v772_v29, %v1655_v46  ;;  %v1304_v32 = vpop.f32.mrb[5].mxu1 }
 0x267   : > { %v775_v34 = vpop.f32.mrb[6].mxu1 }
 0x268   : > { %v779_v36 = vmul.f32 %v1164_v3, %v773_v31  ;;  %v776_v37 = vadd.f32 %v775_v34, %v1657_v48  ;;  %v1305_v38 = vpop.f32.mrb[7].mxu1 }
 0x26a   : > { %v781_v41 = vadd.f32 %v1165_v25, %v779_v36  ;;  %v780_v42 = vmul.f32 %v1164_v3, %v776_v37 }
 0x26c   : > { %vm783_vm11 = vcmp.gt.f32.partialorder %v781_v41, 0.0  ;;  %v785_v45 = vmul.f32 0.2, %v781_v41  ;;  %v782_v47 = vadd.f32 %v1165_v25, %v780_v42 }
 0x26e   : > { %v787_v51 = vsel %vm783_vm11, %v781_v41, %v785_v45  ;;  %vm784_vm14 = vcmp.gt.f32.partialorder %v782_v47, 0.0  ;;  %v786_v52 = vmul.f32 0.2, %v782_v47 }
 0x26f   : > { %v789_v53 = vadd.f32 %v787_v51, %v676_v49 }
 0x270   : > { %v788_v56 = vsel %vm784_vm14, %v782_v47, %v786_v52 }
 0x271   : > { %v790_v57 = vadd.f32 %v788_v56, %v677_v54  ;;  %v900_v58 = vadd.f32 %v898_v55, %v789_v53 }
 0x273   : > { %v901_v60 = vadd.f32 %v899_v59, %v790_v57 }
 0x335   : > { %v994_v61 = vpop.f32.mrb[8].mxu1 }
 0x336   : > { %v995_v62 = vadd.f32 %v994_v61, %v1655_v46  ;;  %v1356_v63 = vpop.f32.mrb[9].mxu1 }
 0x337   : > { %v997_v0 = vpop.f32.mrb[10].mxu1 }
 0x338   : > { %v1001_v1 = vmul.f32 %v1164_v3, %v995_v62  ;;  %v998_v2 = vadd.f32 %v997_v0, %v1657_v48  ;;  %v1357_v4 = vpop.f32.mrb[11].mxu1 }
 0x33a   : > { %v1003_v5 = vadd.f32 %v1165_v25, %v1001_v1  ;;  %v1002_v6 = vmul.f32 %v1164_v3, %v998_v2 }
 0x33c   : > { %vm1005_vm0 = vcmp.gt.f32.partialorder %v1003_v5, 0.0  ;;  %v1007_v7 = vmul.f32 0.2, %v1003_v5  ;;  %v1004_v8 = vadd.f32 %v1165_v25, %v1002_v6 }
 0x33e   : > { %v1009_v9 = vsel %vm1005_vm0, %v1003_v5, %v1007_v7  ;;  %vm1006_vm1 = vcmp.gt.f32.partialorder %v1004_v8, 0.0  ;;  %v1008_v10 = vmul.f32 0.2, %v1004_v8 }
 0x33f   : > { %v1011_v11 = vadd.f32 %v1009_v9, %v900_v58 }
 0x340   : > { %v1010_v46 = vsel %vm1006_vm1, %v1004_v8, %v1008_v10 }
 0x341   : > { %1013 = vst [vmem:[%s372_s15] sm:$0xff] %v1011_v11  ;;  %v1012_v12 = vadd.f32 %v1010_v46, %v901_v60 }
 0x343   : > { %1014 = vst [vmem:[%s372_s15 + $0x8] sm:$0xff] %v1012_v12 }
 0x344 PF: > { %s17_s26 = sadd.s32 1, %s1432_s26   ;;  %s1737_s24 = smov %s1428_s25 }
 0x345   : > { %p14_p5 = scmp.ge.s32.totalorder %s17_s26, 4   ;;  %s1738_s25 = smov %s1740_s27 }
 0x347   :  { %16 = sbr.rel (!%p14_p5) target bundleno = 2 (0x2), region = 84 }

// kernel: dgcnn_forward.16
= control target key start
LH: loop header
LB: loop body
LE: loop exit
PB: predicated region body
PF: predicated region fallthrough
CT: control target
= control target key end

     0   :  { %s1523_s24 = smov 0   ;;  %s1525_s25 = smov 0   ;;  %s1895_s0 = inlined_call_operand.vmem [shape: f32[2,16,128], index: 0, kind: input, shape index: {}, may-alias: {0,1}]   ;;  %s1896_s1 = inlined_call_operand.vmem [shape: f32[2,16,128], index: 1, kind: input, shape index: {}, may-alias: {0,1}]   ;;  %s1897_s2 = inlined_call_operand.vmem [shape: s32[2,16,4], index: 2, kind: input, shape index: {}]   ;;  %s1898_s3 = inlined_call_operand.vmem [shape: bf16[128,256], index: 3, kind: input, shape index: {}]   ;;  %s1899_s4 = inlined_call_operand.vmem [shape: bf16[128,256], index: 4, kind: input, shape index: {}]   ;;  %s1900_s5 = inlined_call_operand.vmem [shape: f32[1,256], index: 5, kind: input, shape index: {}]   ;;  %s1901_s6 = inlined_call_operand.vmem [shape: f32[1,256], index: 6, kind: input, shape index: {}]   ;;  %s1902_s7 = inlined_call_operand.vmem [shape: f32[2,16,256], index: 7, kind: output, shape index: {}]  }
   0x1   :  { %s1527_s26 = smov 0  }
   0x2 LB: > { %s29_s27 = sadd.s32 1, %s1471_s25  ;;  %p1278_p0 = scmp.ge.s32.totalorder %s1475_s26, 1  ;;  %s1475_s26 = sphi %s1527_s26, %s17_s26   ;;  %s1471_s25 = sphi %s1525_s25, %s1904_s25   ;;  %s1467_s24 = sphi %s1523_s24, %s1903_s24  }
   0x3   : > { %p31_p1 = scmp.ge.s32.totalorder %s29_s27, 2  ;;  %p285_p2 = scmp.lt.s32.totalorder %s1475_s26, 3 }
   0x5   : > { %s1906_s27 = smov (%p31_p1, %s29_s27), 0  ;;  %p286_p3 = pnand %p1278_p0, %p285_p2 }
   0x6   : > { %p340_p4 = scmp.lt.s32.totalorder (!%p286_p3), %s1467_s24, 1  ;;  %v1477_v0 = vmov (!%p286_p3), 0   ;;  %v1478_v1 = vmov (!%p286_p3), 1   ;;  %v1405_v2 = vld [vmem:[%s1899_s4 + $0x4] ss:$8 sps:$4 sm:$0xff] (!%p286_p3)   ;;  %v1479_v13 = vmov (!%p286_p3), 2   ;;  %v419_v43 = vlaneseq (!%p286_p3) }
   0x7   : > { %289 = sbr.rel (%p286_p3) target bundleno = 837 (0x345), region = 48  ;;  %1399 = vset.pattern.permute.xlu0 (!%p286_p3), %v1477_v0  ;;  %1400 = vset.pattern.permute.xlu1 (!%p286_p3), %v1478_v1  ;;  %v1407_v3 = vld [vmem:[%s1899_s4] ss:$8 sps:$4 sm:$0xff] (!%p286_p3)   ;;  %v1408_v4 = vld [vmem:[%s1899_s4 + $0x14] ss:$8 sps:$4 sm:$0xff] (!%p286_p3)   ;;  %v1480_v27 = vmov (!%p286_p3), 3  }
   0x8   : > { %533 = vmatprep.mubr.bf16.mxu0 (!%p286_p3), %v1477_v0  ;;  %715 = vmatprep.mubr.bf16.mxu1 (!%p286_p3), %v1477_v0  ;;  %v1410_v5 = vld [vmem:[%s1899_s4 + $0x10] ss:$8 sps:$4 sm:$0xff] (!%p286_p3)   ;;  %v1411_v6 = vld [vmem:[%s1899_s4 + $0x24] ss:$8 sps:$4 sm:$0xff] (!%p286_p3)   ;;  %v1413_v9 = vld [vmem:[%s1899_s4 + $0x20] ss:$8 sps:$4 sm:$0xff] (!%p286_p3)  }
   0x9   : > { %501 = vmatprep.subr.bf16.mxu0 (!%p286_p3), %v1405_v2  ;;  %v1414_v10 = vld [vmem:[%s1899_s4 + $0x34] ss:$8 sps:$4 sm:$0xff] (!%p286_p3)   ;;  %v1416_v11 = vld [vmem:[%s1899_s4 + $0x30] ss:$8 sps:$4 sm:$0xff] (!%p286_p3)   ;;  %v1417_v12 = vld [vmem:[%s1899_s4 + $0x44] ss:$8 sps:$4 sm:$0xff] (!%p286_p3)  }
   0xa   : > { %502 = vmatpush1.bf16.msra.mxu0 (!%p286_p3), %v1407_v3  ;;  %v1419_v14 = vld [vmem:[%s1899_s4 + $0x40] ss:$8 sps:$4 sm:$0xff] (!%p286_p3)   ;;  %v1420_v15 = vld [vmem:[%s1899_s4 + $0x54] ss:$8 sps:$4 sm:$0xff] (!%p286_p3)   ;;  %v1422_v16 = vld [vmem:[%s1899_s4 + $0x50] ss:$8 sps:$4 sm:$0xff] (!%p286_p3)  }
   0xb   : > { %503 = vmatprep.subr.bf16.mxu0 (!%p286_p3), %v1408_v4  ;;  %v1423_v17 = vld [vmem:[%s1899_s4 + $0x64] ss:$8 sps:$4 sm:$0xff] (!%p286_p3)   ;;  %v1425_v18 = vld [vmem:[%s1899_s4 + $0x60] ss:$8 sps:$4 sm:$0xff] (!%p286_p3)   ;;  %v1426_v19 = vld [vmem:[%s1899_s4 + $0x74] ss:$8 sps:$4 sm:$0xff] (!%p286_p3)  }
   0xc   : > { %v1428_v20 = vld [vmem:[%s1899_s4 + $0x70] ss:$8 sps:$4 sm:$0xff] (!%p286_p3)   ;;  %v1612_v25 = vld [vmem:[%s1898_s3 + $0x4] ss:$8 sps:$4 sm:$0xff] (!%p286_p3)   ;;  %v1617_v28 = vld [vmem:[%s1898_s3] ss:$8 sps:$4 sm:$0xff] (!%p286_p3)  }
   0xd   : > { %v1481_v30 = vmov (!%p286_p3), 0.0   ;;  %v1625_v31 = vld [vmem:[%s1898_s3 + $0x14] ss:$8 sps:$4 sm:$0xff] (!%p286_p3)   ;;  %683 = vmatprep.subr.bf16.mxu1 (!%p286_p3), %v1612_v25  ;;  %v1632_v32 = vld [vmem:[%s1898_s3 + $0x10] ss:$8 sps:$4 sm:$0xff] (!%p286_p3)   ;;  %vm1482_vm0 = vmmov (!%p286_p3), 0  }
   0xe   : > { %s1908_s24 = smov (!%p340_p4, %s1467_s24), 1  ;;  %504 = vmatpush1.bf16.msra.mxu0 %v1410_v5  ;;  %684 = vmatpush1.bf16.msra.mxu1 %v1617_v28  ;;  %v1640_v33 = vld [vmem:[%s1898_s3 + $0x24] ss:$8 sps:$4 sm:$0xff]   ;;  %v1648_v34 = vld [vmem:[%s1898_s3 + $0x20] ss:$8 sps:$4 sm:$0xff]   ;;  %v1701_v44 = vand.u32 127, %v419_v43 }
   0xf   : > { %s1556_s11 = sshll.u32 %s1908_s24, 4  ;;  %505 = vmatprep.subr.bf16.mxu0 %v1411_v6  ;;  %685 = vmatprep.subr.bf16.mxu1 %v1625_v31  ;;  %v1654_v35 = vld [vmem:[%s1898_s3 + $0x34] ss:$8 sps:$4 sm:$0xff]   ;;  %v1660_v36 = vld [vmem:[%s1898_s3 + $0x30] ss:$8 sps:$4 sm:$0xff]   ;;  %vm557_vm3 = vcmask 130048  }
  0x10   : > { %s363_s16 = scalar_lea.vmem %s1897_s2, %s1556_s11  ;;  %s353_s23 = scalar_lea.vmem %s1896_s1, %s1556_s11  ;;  %v1666_v37 = vld [vmem:[%s1898_s3 + $0x44] ss:$8 sps:$4 sm:$0xff]   ;;  %v1673_v38 = vld [vmem:[%s1898_s3 + $0x40] ss:$8 sps:$4 sm:$0xff]   ;;  %v1679_v39 = vld [vmem:[%s1898_s3 + $0x54] ss:$8 sps:$4 sm:$0xff]  }
  0x11   : > { %v383_v7 = vld [vmem:[%s363_s16] sm:$0xff]  ;;  %v384_v8 = vld [vmem:[%s363_s16 + $0x8] sm:$0xff]  ;;  %s344_s30 = scalar_lea.vmem %s1895_s0, %s1556_s11  ;;  %v1684_v40 = vld [vmem:[%s1898_s3 + $0x50] ss:$8 sps:$4 sm:$0xff]   ;;  %s1336_s8 = sshll.u32 %s1908_s24, 5 }
  0x12   : > { %545 = vperm.xlu0 %1399, %v383_v7   ;;  %773 = vperm.xlu1 %1400, %v383_v7   ;;  %v380_v21 = vld [vmem:[%s353_s23] sm:$0xff]  ;;  %v381_v22 = vld [vmem:[%s353_s23 + $0x8] sm:$0xff]  ;;  %v1743_v60 = vld [vmem:[%s1898_s3 + $0x74] ss:$8 sps:$4 sm:$0xff]   ;;  %s374_s12 = scalar_lea.vmem %s1902_s7, %s1336_s8 }
  0x13   : > { %506 = vmatpush1.bf16.msra.mxu0 %v1413_v9  ;;  %v377_v23 = vld [vmem:[%s344_s30] sm:$0xff]  ;;  %v378_v24 = vld [vmem:[%s344_s30 + $0x8] sm:$0xff]  ;;  %v382_v26 = vpack.c.bf16 %v381_v22, %v380_v21  ;;  %686 = vmatpush1.bf16.msra.mxu1 %v1632_v32  ;;  %v1748_v61 = vld [vmem:[%s1898_s3 + $0x70] ss:$8 sps:$4 sm:$0xff]  }
  0x14   : > { %507 = vmatprep.subr.bf16.mxu0 %v1414_v10  ;;  %v1619_v29 = vpack.c.bf16 %v378_v24, %v377_v23  ;;  %687 = vmatprep.subr.bf16.mxu1 %v1640_v33  ;;  %v1689_v41 = vld [vmem:[%s1898_s3 + $0x64] ss:$8 sps:$4 sm:$0xff]   ;;  %v1696_v42 = vld [vmem:[%s1898_s3 + $0x60] ss:$8 sps:$4 sm:$0xff]  }
  0x15   : > { %v417_v24 = vld [vmem:[%s1900_s5] sm:$0x3] }
  0x16   : > { %548 = vperm.xlu0 %1399, %v384_v8   ;;  %776 = vperm.xlu1 %1400, %v384_v8  }
  0x17   : > { %508 = vmatpush1.bf16.msra.mxu0 %v1416_v11  ;;  %688 = vmatpush1.bf16.msra.mxu1 %v1648_v34 }
  0x18   : > { %509 = vmatprep.subr.bf16.mxu0 %v1417_v12  ;;  %689 = vmatprep.subr.bf16.mxu1 %v1654_v35 }
  0x1a   : > { %1402 = vset.pattern.permute.xlu1 %v1479_v13  ;;  %1401 = vset.pattern.permute.xlu0 %v1479_v13 }
  0x1b   : > { %901 = vperm.xlu1 %1402, %v384_v8   ;;  %898 = vperm.xlu0 %1401, %v383_v7  }
  0x1c   : > { %510 = vmatpush1.bf16.msra.mxu0 %v1419_v14  ;;  %690 = vmatpush1.bf16.msra.mxu1 %v1660_v36 }
  0x1d   : > { %511 = vmatprep.subr.bf16.mxu0 %v1420_v15  ;;  %691 = vmatprep.subr.bf16.mxu1 %v1666_v37 }
  0x1f   : > { %1403 = vset.pattern.permute.xlu1 %v1480_v27  ;;  %1404 = vset.pattern.permute.xlu0 %v1480_v27 }
  0x20   : > { %512 = vmatpush1.bf16.msra.mxu0 %v1422_v16  ;;  %1023 = vperm.xlu1 %1403, %v383_v7  }
  0x21   : > { %513 = vmatprep.subr.bf16.mxu0 %v1423_v17  ;;  %1026 = vperm.xlu0 %1404, %v384_v8  }
  0x22   : > { %692 = vmatpush1.bf16.msra.mxu1 %v1673_v38 }
  0x23   : > { %693 = vmatprep.subr.bf16.mxu1 %v1679_v39 }
  0x24   : > { %514 = vmatpush1.bf16.msra.mxu0 %v1425_v18 }
  0x25   : > { %515 = vmatprep.subr.bf16.mxu0 %v1426_v19 }
  0x26   : > { %694 = vmatpush1.bf16.msra.mxu1 %v1684_v40 }
  0x27   : > { %695 = vmatprep.subr.bf16.mxu1 %v1689_v41 }
  0x28   : > { %516 = vmatpush1.bf16.msra.mxu0 %v1428_v20 }
  0x29   : > { %1345 = vmatprep.subr.bf16.mxu0 %v1481_v30 }
  0x2a   : > { %696 = vmatpush1.bf16.msra.mxu1 %v1696_v42 }
  0x2b   : > { %534 = vmatmul.mubr.bf16.vlgmr.msra.gmra.mrb[0].mxu0 %v382_v26  ;;  %697 = vmatprep.subr.bf16.mxu1 %v1743_v60  ;;  %v418_v26 = vld [vmem:[%s1901_s6] sm:$0x3] }
  0x2c   : > { %1346 = vmatpush3.bf16.msra.mxu0 %v1619_v29  ;;  %1347 = vmatprep.mubr.msk.bf16.mxu0 %vm1482_vm0, %v1481_v30 }
  0x2d   : > { %1351 = vmatprep.subr.bf16.mxu0 %v1481_v30 }
  0x2e   : > { %698 = vmatpush1.bf16.msra.mxu1 %v1748_v61 }
  0x2f   : > { %830 = vmatprep.subr.bf16.mxu1 %v1612_v25 }
  0x91   : > { %v546_v45 = vpop.permute.xlu0 %545  ;;  %v774_v46 = vpop.permute.xlu1 %773 }
  0x92   : > { %vm550_vm1 = vcmp.eq.s32.totalorder %v1701_v44, %v546_v45  ;;  %vm778_vm4 = vcmp.eq.s32.totalorder %v1701_v44, %v774_v46 }
  0x93   : > { %v1303_v48 = vsel %vm550_vm1, 1.0, %v1481_v30  ;;  %v1322_v52 = vsel %vm778_vm4, 1.0, %v1481_v30 }
  0x95   : > { %v549_v47 = vpop.permute.xlu0 %548  ;;  %v777_v50 = vpop.permute.xlu1 %776 }
  0x96   : > { %vm551_vm2 = vcmp.eq.s32.totalorder %v1701_v44, %v549_v47  ;;  %vm779_vm5 = vcmp.eq.s32.totalorder %v1701_v44, %v777_v50 }
  0x97   : > { %v1304_v49 = vsel %vm551_vm2, 1.0, %v1481_v30  ;;  %v1323_v53 = vsel %vm779_vm5, 1.0, %v1481_v30 }
  0x98   : > { %v556_v51 = vpack.c.bf16 %v1304_v49, %v1303_v48  ;;  %v784_v56 = vpack.c.bf16 %v1323_v53, %v1322_v52 }
  0x9a   : > { %1348 = vmatmul.mubr.msk.bf16.vlgmr.msra.gmra.mrb[4].mxu0 %vm557_vm3, %v556_v51  ;;  %v902_v54 = vpop.permute.xlu1 %901  ;;  %v899_v55 = vpop.permute.xlu0 %898 }
  0x9b   : > { %1352 = vmatpush3.bf16.msra.mxu0 %v1619_v29  ;;  %1353 = vmatprep.mubr.msk.bf16.mxu0 %vm1482_vm0, %v1481_v30  ;;  %vm904_vm6 = vcmp.eq.s32.totalorder %v1701_v44, %v902_v54  ;;  %vm903_vm7 = vcmp.eq.s32.totalorder %v1701_v44, %v899_v55 }
  0x9c   : > { %1357 = vmatprep.subr.bf16.mxu0 %v1481_v30  ;;  %v1326_v57 = vsel %vm904_vm6, 1.0, %v1481_v30  ;;  %v1325_v58 = vsel %vm903_vm7, 1.0, %v1481_v30 }
  0x9d   : > { %v909_v59 = vpack.c.bf16 %v1326_v57, %v1325_v58 }
  0x9f   : > { %v1024_v13 = vpop.permute.xlu1 %1023 }
  0xa0   : > { %v1027_v15 = vpop.permute.xlu0 %1026  ;;  %vm1028_vm8 = vcmp.eq.s32.totalorder %v1701_v44, %v1024_v13 }
  0xa1   : > { %vm1029_vm9 = vcmp.eq.s32.totalorder %v1701_v44, %v1027_v15  ;;  %v1328_v20 = vsel %vm1028_vm8, 1.0, %v1481_v30 }
  0xa2   : > { %1354 = vmatmul.mubr.msk.bf16.vlgmr.msra.gmra.mrb[8].mxu0 %vm557_vm3, %v784_v56  ;;  %v1329_v21 = vsel %vm1029_vm9, 1.0, %v1481_v30 }
  0xa3   : > { %1358 = vmatpush3.bf16.msra.mxu0 %v1619_v29  ;;  %1359 = vmatprep.mubr.msk.bf16.mxu0 %vm1482_vm0, %v1481_v30  ;;  %v1034_v22 = vpack.c.bf16 %v1329_v21, %v1328_v20 }
  0xa4   : > { %955 = vmatprep.subr.bf16.mxu0 %v1612_v25 }
  0xaa   : > { %1360 = vmatmul.mubr.msk.bf16.vlgmr.msra.gmra.mrb[12].mxu0 %vm557_vm3, %v909_v59 }
  0xab   : > { %956 = vmatpush1.bf16.msra.mxu0 %v1617_v28  ;;  %987 = vmatprep.mubr.bf16.mxu0 %v1477_v0 }
  0xac   : > { %957 = vmatprep.subr.bf16.mxu0 %v1625_v31 }
  0xaf   : > { %958 = vmatpush1.bf16.msra.mxu0 %v1632_v32 }
  0xb0   : > { %959 = vmatprep.subr.bf16.mxu0 %v1640_v33 }
  0xb3   : > { %960 = vmatpush1.bf16.msra.mxu0 %v1648_v34 }
  0xb4   : > { %961 = vmatprep.subr.bf16.mxu0 %v1654_v35 }
  0xb7   : > { %962 = vmatpush1.bf16.msra.mxu0 %v1660_v36 }
  0xb8   : > { %963 = vmatprep.subr.bf16.mxu0 %v1666_v37 }
  0xbb   : > { %964 = vmatpush1.bf16.msra.mxu0 %v1673_v38 }
  0xbc   : > { %965 = vmatprep.subr.bf16.mxu0 %v1679_v39 }
  0xbf   : > { %966 = vmatpush1.bf16.msra.mxu0 %v1684_v40 }
  0xc0   : > { %967 = vmatprep.subr.bf16.mxu0 %v1689_v41 }
  0xc3   : > { %968 = vmatpush1.bf16.msra.mxu0 %v1696_v42 }
  0xc4   : > { %969 = vmatprep.subr.bf16.mxu0 %v1743_v60 }
  0xc7   : > { %970 = vmatpush1.bf16.msra.mxu0 %v1748_v61 }
  0xc8   : > { %1363 = vmatprep.subr.bf16.mxu0 %v1481_v30 }
  0xfe   : > { %v1756_v62 = vpop.f32.mrb[0].mxu0 }
  0xff   : > { %v1758_v63 = vpop.f32.mrb[1].mxu0 }
 0x100   : > { %v1760_v1 = vpop.f32.mrb[2].mxu0 }
 0x101   : > { %v1762_v2 = vpop.f32.mrb[3].mxu0 }
 0x16d   : > { %v595_v3 = vpop.f32.mrb[4].mxu0 }
 0x16e   : > { %v1349_v4 = vpop.f32.mrb[5].mxu0 }
 0x16f   : > { %v598_v5 = vpop.f32.mrb[6].mxu0 }
 0x170   : > { %v602_v6 = vpack.c.bf16 %v598_v5, %v595_v3  ;;  %v1350_v7 = vpop.f32.mrb[7].mxu0 }
 0x172   : > { %716 = vmatmul.mubr.bf16.vlgmr.msra.gmra.mrb[0].mxu1 %v602_v6 }
 0x173   : > { %831 = vmatpush1.bf16.msra.mxu1 %v1617_v28  ;;  %862 = vmatprep.mubr.bf16.mxu1 %v1477_v0 }
 0x174   : > { %832 = vmatprep.subr.bf16.mxu1 %v1625_v31 }
 0x175   : > { %v822_v8 = vpop.f32.mrb[8].mxu0 }
 0x176   : > { %v1355_v9 = vpop.f32.mrb[9].mxu0 }
 0x177   : > { %833 = vmatpush1.bf16.msra.mxu1 %v1632_v32  ;;  %v825_v10 = vpop.f32.mrb[10].mxu0 }
 0x178   : > { %v829_v11 = vpack.c.bf16 %v825_v10, %v822_v8  ;;  %v1356_v12 = vpop.f32.mrb[11].mxu0  ;;  %834 = vmatprep.subr.bf16.mxu1 %v1640_v33 }
 0x17b   : > { %835 = vmatpush1.bf16.msra.mxu1 %v1648_v34 }
 0x17c   : > { %836 = vmatprep.subr.bf16.mxu1 %v1654_v35 }
 0x17d   : > { %v947_v14 = vpop.f32.mrb[12].mxu0 }
 0x17e   : > { %v1361_v16 = vpop.f32.mrb[13].mxu0 }
 0x17f   : > { %837 = vmatpush1.bf16.msra.mxu1 %v1660_v36  ;;  %v950_v17 = vpop.f32.mrb[14].mxu0 }
 0x180   : > { %v954_v18 = vpack.c.bf16 %v950_v17, %v947_v14  ;;  %v1362_v19 = vpop.f32.mrb[15].mxu0  ;;  %838 = vmatprep.subr.bf16.mxu1 %v1666_v37 }
 0x182   : > { %988 = vmatmul.mubr.bf16.vlgmr.msra.gmra.mrb[16].mxu0 %v954_v18 }
 0x183   : > { %839 = vmatpush1.bf16.msra.mxu1 %v1673_v38  ;;  %1364 = vmatpush3.bf16.msra.mxu0 %v1619_v29 }
 0x184   : > { %840 = vmatprep.subr.bf16.mxu1 %v1679_v39  ;;  %1365 = vmatprep.mubr.msk.bf16.mxu0 %vm1482_vm0, %v1481_v30 }
 0x187   : > { %841 = vmatpush1.bf16.msra.mxu1 %v1684_v40 }
 0x188   : > { %842 = vmatprep.subr.bf16.mxu1 %v1689_v41 }
 0x18a   : > { %1366 = vmatmul.mubr.msk.bf16.vlgmr.msra.gmra.mrb[20].mxu0 %vm557_vm3, %v1034_v22 }
 0x18b   : > { %843 = vmatpush1.bf16.msra.mxu1 %v1696_v42 }
 0x18c   : > { %844 = vmatprep.subr.bf16.mxu1 %v1743_v60 }
 0x18f   : > { %845 = vmatpush1.bf16.msra.mxu1 %v1748_v61 }
 0x190   : > { %1080 = vmatprep.subr.bf16.mxu1 %v1612_v25 }
 0x192   : > { %863 = vmatmul.mubr.bf16.vlgmr.msra.gmra.mrb[4].mxu1 %v829_v11 }
 0x193   : > { %1081 = vmatpush1.bf16.msra.mxu1 %v1617_v28  ;;  %1112 = vmatprep.mubr.bf16.mxu1 %v1477_v0  ;;  %v728_v0 = vshrl.u32 %v419_v43, 7 }
 0x194   : > { %1082 = vmatprep.subr.bf16.mxu1 %v1625_v31 }
 0x195   : > { %v729_v23 = vsub.s32 0, %v728_v0  ;;  %v733_v25 = vsub.s32 1, %v728_v0 }
 0x197   : > { %1083 = vmatpush1.bf16.msra.mxu1 %v1632_v32  ;;  %v1812_v27 = vrot.slane %v417_v24, %v729_v23  ;;  %v1814_v29 = vrot.slane %v417_v24, %v733_v25  ;;  %v1817_v31 = vrot.slane %v418_v26, %v729_v23 }
 0x198   : > { %1084 = vmatprep.subr.bf16.mxu1 %v1640_v33 }
 0x19b   : > { %1085 = vmatpush1.bf16.msra.mxu1 %v1648_v34  ;;  %v1820_v34 = vrot.slane %v418_v26, %v733_v25 }
 0x19c   : > { %1086 = vmatprep.subr.bf16.mxu1 %v1654_v35 }
 0x19f   : > { %1087 = vmatpush1.bf16.msra.mxu1 %v1660_v36 }
 0x1a0   : > { %1088 = vmatprep.subr.bf16.mxu1 %v1666_v37 }
 0x1a3   : > { %1089 = vmatpush1.bf16.msra.mxu1 %v1673_v38 }
 0x1a4   : > { %1090 = vmatprep.subr.bf16.mxu1 %v1679_v39 }
 0x1a7   : > { %1091 = vmatpush1.bf16.msra.mxu1 %v1684_v40 }
 0x1a8   : > { %1092 = vmatprep.subr.bf16.mxu1 %v1689_v41 }
 0x1ab   : > { %1093 = vmatpush1.bf16.msra.mxu1 %v1696_v42 }
 0x1ac   : > { %1094 = vmatprep.subr.bf16.mxu1 %v1743_v60 }
 0x1af   : > { %1095 = vmatpush1.bf16.msra.mxu1 %v1748_v61 }
 0x245   : > { %v717_v28 = vpop.f32.mrb[0].mxu1 }
 0x246   : > { %v718_v30 = vadd.f32 %v717_v28, %v1756_v62  ;;  %v719_v32 = vpop.f32.mrb[1].mxu1 }
 0x247   : > { %v720_v33 = vadd.f32 %v719_v32, %v1758_v63  ;;  %v721_v35 = vpop.f32.mrb[2].mxu1 }
 0x248   : > { %v737_v36 = vmul.f32 %v1812_v27, %v718_v30  ;;  %v722_v37 = vadd.f32 %v721_v35, %v1760_v1  ;;  %v723_v38 = vpop.f32.mrb[3].mxu1 }
 0x249   : > { %v738_v39 = vmul.f32 %v1814_v29, %v720_v33  ;;  %v724_v40 = vadd.f32 %v723_v38, %v1762_v2 }
 0x24a   : > { %v752_v41 = vadd.f32 %v1817_v31, %v737_v36  ;;  %v739_v42 = vmul.f32 %v1812_v27, %v722_v37 }
 0x24b   : > { %v753_v43 = vadd.f32 %v1820_v34, %v738_v39  ;;  %v740_v44 = vmul.f32 %v1814_v29, %v724_v40 }
 0x24c   : > { %v754_v45 = vadd.f32 %v1817_v31, %v739_v42  ;;  %vm756_vm10 = vcmp.gt.f32.partialorder %v752_v41, 0.0  ;;  %v760_v9 = vmul.f32 0.2, %v752_v41 }
 0x24d   : > { %v755_v46 = vadd.f32 %v1820_v34, %v740_v44  ;;  %v761_v10 = vmul.f32 0.2, %v753_v43  ;;  %vm757_vm11 = vcmp.gt.f32.partialorder %v753_v43, 0.0 }
 0x24e   : > { %v762_v11 = vmul.f32 0.2, %v754_v45  ;;  %vm758_vm12 = vcmp.gt.f32.partialorder %v754_v45, 0.0  ;;  %v764_v18 = vsel %vm756_vm10, %v752_v41, %v760_v9 }
 0x24f   : > { %v763_v12 = vmul.f32 0.2, %v755_v46  ;;  %vm759_vm13 = vcmp.gt.f32.partialorder %v755_v46, 0.0  ;;  %v765_v19 = vsel %vm757_vm11, %v753_v43, %v761_v10 }
 0x250   : > { %v766_v0 = vsel %vm758_vm12, %v754_v45, %v762_v11 }
 0x251   : > { %v767_v23 = vsel %vm759_vm13, %v755_v46, %v763_v12 }
 0x255   : > { %v989_v47 = vpop.f32.mrb[16].mxu0 }
 0x256   : > { %v990_v48 = vadd.f32 %v989_v47, %v1756_v62  ;;  %v991_v49 = vpop.f32.mrb[17].mxu0 }
 0x257   : > { %v992_v50 = vadd.f32 %v991_v49, %v1758_v63  ;;  %v993_v51 = vpop.f32.mrb[18].mxu0 }
 0x258   : > { %v998_v52 = vmul.f32 %v990_v48, %v1812_v27  ;;  %v994_v53 = vadd.f32 %v993_v51, %v1760_v1  ;;  %v995_v54 = vpop.f32.mrb[19].mxu0 }
 0x259   : > { %v999_v55 = vmul.f32 %v992_v50, %v1814_v29  ;;  %v996_v56 = vadd.f32 %v995_v54, %v1762_v2 }
 0x25a   : > { %v1002_v57 = vadd.f32 %v998_v52, %v1817_v31  ;;  %v1000_v58 = vmul.f32 %v994_v53, %v1812_v27 }
 0x25b   : > { %v1003_v59 = vadd.f32 %v999_v55, %v1820_v34  ;;  %v1001_v60 = vmul.f32 %v996_v56, %v1814_v29 }
 0x25c   : > { %v1843_v61 = vadd.f32 %v1000_v58, %v1817_v31  ;;  %vm1006_vm14 = vcmp.gt.f32.partialorder %v1002_v57, 0.0  ;;  %v1010_v26 = vmul.f32 0.2, %v1002_v57 }
 0x25d   : > { %v1846_v3 = vadd.f32 %v1001_v60, %v1820_v34  ;;  %v1072_v4 = vpop.f32.mrb[20].mxu0  ;;  %vm1007_vm15 = vcmp.gt.f32.partialorder %v1003_v59, 0.0  ;;  %v1011_v32 = vmul.f32 0.2, %v1003_v59 }
 0x25e   : > { %v1367_v5 = vpop.f32.mrb[21].mxu0  ;;  %vm1008_vm0 = vcmp.gt.f32.partialorder %v1843_v61, 0.0  ;;  %v1012_v38 = vmul.f32 0.2, %v1843_v61  ;;  %v1014_v47 = vsel %vm1006_vm14, %v1002_v57, %v1010_v26 }
 0x25f   : > { %v1075_v6 = vpop.f32.mrb[22].mxu0  ;;  %v1013_v41 = vmul.f32 0.2, %v1846_v3  ;;  %vm1009_vm5 = vcmp.gt.f32.partialorder %v1846_v3, 0.0  ;;  %v1015_v50 = vsel %vm1007_vm15, %v1003_v59, %v1011_v32 }
 0x260   : > { %v1079_v7 = vpack.c.bf16 %v1075_v6, %v1072_v4  ;;  %v1368_v8 = vpop.f32.mrb[23].mxu0  ;;  %v1016_v54 = vsel %vm1008_vm0, %v1843_v61, %v1012_v38 }
 0x261   : > { %v1017_v58 = vsel %vm1009_vm5, %v1846_v3, %v1013_v41 }
 0x262   : > { %1113 = vmatmul.mubr.bf16.vlgmr.msra.gmra.mrb[8].mxu1 %v1079_v7 }
 0x265   : > { %v864_v13 = vpop.f32.mrb[4].mxu1 }
 0x266   : > { %v865_v14 = vadd.f32 %v864_v13, %v1756_v62  ;;  %v866_v15 = vpop.f32.mrb[5].mxu1 }
 0x267   : > { %v867_v16 = vadd.f32 %v866_v15, %v1758_v63  ;;  %v868_v17 = vpop.f32.mrb[6].mxu1 }
 0x268   : > { %v873_v20 = vmul.f32 %v865_v14, %v1812_v27  ;;  %v869_v21 = vadd.f32 %v868_v17, %v1760_v1  ;;  %v870_v22 = vpop.f32.mrb[7].mxu1 }
 0x269   : > { %v874_v24 = vmul.f32 %v867_v16, %v1814_v29  ;;  %v871_v25 = vadd.f32 %v870_v22, %v1762_v2 }
 0x26a   : > { %v877_v28 = vadd.f32 %v873_v20, %v1817_v31  ;;  %v875_v30 = vmul.f32 %v869_v21, %v1812_v27 }
 0x26b   : > { %v878_v33 = vadd.f32 %v874_v24, %v1820_v34  ;;  %v876_v35 = vmul.f32 %v871_v25, %v1814_v29 }
 0x26c   : > { %vm881_vm1 = vcmp.gt.f32.partialorder %v877_v28, 0.0  ;;  %v885_v36 = vmul.f32 0.2, %v877_v28  ;;  %v879_v37 = vadd.f32 %v875_v30, %v1817_v31 }
 0x26d   : > { %vm882_vm2 = vcmp.gt.f32.partialorder %v878_v33, 0.0  ;;  %v886_v39 = vmul.f32 0.2, %v878_v33  ;;  %v880_v40 = vadd.f32 %v876_v35, %v1820_v34 }
 0x26e   : > { %v889_v42 = vsel %vm881_vm1, %v877_v28, %v885_v36  ;;  %vm883_vm3 = vcmp.gt.f32.partialorder %v879_v37, 0.0  ;;  %v887_v43 = vmul.f32 0.2, %v879_v37 }
 0x26f   : > { %v893_v44 = vadd.f32 %v889_v42, %v764_v18  ;;  %v890_v45 = vsel %vm882_vm2, %v878_v33, %v886_v39  ;;  %vm884_vm4 = vcmp.gt.f32.partialorder %v880_v40, 0.0  ;;  %v888_v46 = vmul.f32 0.2, %v880_v40 }
 0x270   : > { %v894_v48 = vadd.f32 %v890_v45, %v765_v19  ;;  %v891_v49 = vsel %vm883_vm3, %v879_v37, %v887_v43 }
 0x271   : > { %v895_v51 = vadd.f32 %v891_v49, %v766_v0  ;;  %v892_v52 = vsel %vm884_vm4, %v880_v40, %v888_v46  ;;  %v1018_v53 = vadd.f32 %v1014_v47, %v893_v44 }
 0x272   : > { %v896_v55 = vadd.f32 %v892_v52, %v767_v23  ;;  %v1019_v56 = vadd.f32 %v1015_v50, %v894_v48 }
 0x273   : > { %v1020_v60 = vadd.f32 %v1016_v54, %v895_v51 }
 0x274   : > { %v1021_v57 = vadd.f32 %v1017_v58, %v896_v55 }
 0x335   : > { %v1114_v4 = vpop.f32.mrb[8].mxu1 }
 0x336   : > { %v1115_v5 = vadd.f32 %v1114_v4, %v1756_v62  ;;  %v1116_v6 = vpop.f32.mrb[9].mxu1 }
 0x337   : > { %v1117_v59 = vadd.f32 %v1116_v6, %v1758_v63  ;;  %v1118_v7 = vpop.f32.mrb[10].mxu1 }
 0x338   : > { %v1123_v8 = vmul.f32 %v1115_v5, %v1812_v27  ;;  %v1119_v9 = vadd.f32 %v1118_v7, %v1760_v1  ;;  %v1120_v10 = vpop.f32.mrb[11].mxu1 }
 0x339   : > { %v1124_v61 = vmul.f32 %v1117_v59, %v1814_v29  ;;  %v1121_v11 = vadd.f32 %v1120_v10, %v1762_v2 }
 0x33a   : > { %v1127_v3 = vadd.f32 %v1123_v8, %v1817_v31  ;;  %v1125_v12 = vmul.f32 %v1119_v9, %v1812_v27 }
 0x33b   : > { %v1128_v62 = vadd.f32 %v1124_v61, %v1820_v34  ;;  %v1126_v13 = vmul.f32 %v1121_v11, %v1814_v29 }
 0x33c   : > { %vm1131_vm6 = vcmp.gt.f32.partialorder %v1127_v3, 0.0  ;;  %v1135_v63 = vmul.f32 0.2, %v1127_v3  ;;  %v1129_v14 = vadd.f32 %v1125_v12, %v1817_v31 }
 0x33d   : > { %vm1132_vm7 = vcmp.gt.f32.partialorder %v1128_v62, 0.0  ;;  %v1136_v1 = vmul.f32 0.2, %v1128_v62  ;;  %v1130_v15 = vadd.f32 %v1126_v13, %v1820_v34 }
 0x33e   : > { %v1139_v2 = vsel %vm1131_vm6, %v1127_v3, %v1135_v63  ;;  %vm1133_vm8 = vcmp.gt.f32.partialorder %v1129_v14, 0.0  ;;  %v1137_v27 = vmul.f32 0.2, %v1129_v14 }
 0x33f   : > { %v1143_v16 = vadd.f32 %v1139_v2, %v1018_v53  ;;  %v1140_v17 = vsel %vm1132_vm7, %v1128_v62, %v1136_v1  ;;  %vm1134_vm9 = vcmp.gt.f32.partialorder %v1130_v15, 0.0  ;;  %v1138_v18 = vmul.f32 0.2, %v1130_v15 }
 0x340   : > { %v1144_v29 = vadd.f32 %v1140_v17, %v1019_v56  ;;  %v1141_v19 = vsel %vm1133_vm8, %v1129_v14, %v1137_v27 }
 0x341   : > { %1147 = vst [vmem:[%s374_s12] sm:$0xff] %v1143_v16  ;;  %v1145_v20 = vadd.f32 %v1141_v19, %v1020_v60  ;;  %v1142_v31 = vsel %vm1134_vm9, %v1130_v15, %v1138_v18 }
 0x342   : > { %1148 = vst [vmem:[%s374_s12 + $0x8] sm:$0xff] %v1144_v29  ;;  %v1146_v21 = vadd.f32 %v1142_v31, %v1021_v57 }
 0x343   : > { %1149 = vst [vmem:[%s374_s12 + $0x10] sm:$0xff] %v1145_v20 }
 0x344   : > { %1150 = vst [vmem:[%s374_s12 + $0x18] sm:$0xff] %v1146_v21 }
 0x345 PF: > { %s17_s26 = sadd.s32 1, %s1475_s26   ;;  %s1903_s24 = smov %s1471_s25 }
 0x346   : > { %p14_p5 = scmp.ge.s32.totalorder %s17_s26, 4   ;;  %s1904_s25 = smov %s1906_s27 }
 0x348   :  { %16 = sbr.rel (!%p14_p5) target bundleno = 2 (0x2), region = 84 }

// kernel: dgcnn_forward.17
= control target key start
LH: loop header
LB: loop body
LE: loop exit
PB: predicated region body
PF: predicated region fallthrough
CT: control target
= control target key end

     0   :  { %13 = vsyncpa [#allocation3], 0  ;;  %s1859_s0 = inlined_call_operand.vmem [shape: f32[2,16,128], index: 0, kind: input, shape index: {}]   ;;  %s1860_s1 = inlined_call_operand.vmem [shape: f32[2,16,128], index: 1, kind: input, shape index: {}]   ;;  %s1861_s2 = inlined_call_operand.vmem [shape: f32[2,16,128], index: 2, kind: input, shape index: {}]   ;;  %s1862_s3 = inlined_call_operand.vmem [shape: f32[2,16,256], index: 3, kind: input, shape index: {}]   ;;  %s1863_s4 = inlined_call_operand.vmem [shape: bf16[640,128], index: 4, kind: input, shape index: {}]   ;;  %s1864_s5 = inlined_call_operand.vmem [shape: f32[1,128], index: 5, kind: input, shape index: {}]   ;;  %s1865_s6 = inlined_call_operand.vmem [shape: f32[1,128], index: 6, kind: input, shape index: {}]   ;;  %s1866_s7 = inlined_call_operand.vmem [shape: bf16[1,128], index: 7, kind: input, shape index: {}]   ;;  %s1867_s8 = inlined_call_operand.hbm [shape: f32[2,1,16], index: 8, kind: output, shape index: {}]  }
   0x1   :  { %15 = vsyncpa [#allocation3 + $0x1], 0  ;;  %s1561_s27 = smov 0   ;;  %s1563_s28 = smov 0  }
   0x2   :  { %s1565_s29 = smov 0   ;;  %s1567_s30 = smov 0  }
   0x3   :  { %s1569_s9 = smov 0   ;;  %s1571_s10 = smov 0  }
   0x4 LB: > { %s1157_s11 = sadd.s32 4294967295, %s1511_s10   ;;  %s1158_s12 = sadd.s32 4294967294, %s1511_s10   ;;  %s1511_s10 = sphi %s1571_s10, %s21_s10   ;;  %s1507_s9 = sphi %s1569_s9, %s1874_s9   ;;  %s1503_s30 = sphi %s1567_s30, %s1873_s30   ;;  %s1499_s29 = sphi %s1565_s29, %s1872_s29   ;;  %s1495_s28 = sphi %s1563_s28, %s1871_s28   ;;  %s1491_s27 = sphi %s1561_s27, %s1870_s27  }
   0x5   : > { %s33_s13 = sadd.s32 1, %s1507_s9  ;;  %s238_s14 = sadd.s32 1, %s1499_s29 }
   0x6   : > { %p35_p0 = scmp.ge.s32.totalorder %s33_s13, 2  ;;  %p248_p1 = scmp.ne.s32.totalorder %s1499_s29, %s1495_s28 }
   0x7   : > { %p249_p2 = scmp.eq.s32.totalorder %s1157_s11, 1  ;;  %p254_p3 = scmp.ne.s32.totalorder %s1495_s28, %s1491_s27 }
   0x8   : > { %s1876_s13 = smov (%p35_p0, %s33_s13), 0  ;;  %p255_p5 = scmp.eq.s32.totalorder %s1158_s12, 1 }
   0x9   : > { %p1601_p4 = por %p249_p2, %p248_p1  ;;  %s233_s16 = ssub.s32 %s1507_s9, %s1876_s13 }
   0xa   : > { %p1161_p6 = scmp.ge.s32.totalorder %s1511_s10, 1  ;;  %p236_p7 = scmp.eq.s32.totalorder %s233_s16, 0 }
   0xb   : > { %p1608_p8 = por %p255_p5, %p254_p3  ;;  %p338_p9 = scmp.lt.s32.totalorder %s1511_s10, 3 }
   0xc   : > { %s1614_s18 = scalar_select %p236_p7, %s1499_s29, %s238_s14  }
   0xd   : > { %p339_p10 = pnand %p1161_p6, %p338_p9 }
   0xe   : > { %v1393_v0 = vld [vmem:[%s1863_s4 + $0x40] sm:$0xff] (!%p339_p10)   ;;  %v1513_v1 = vmov (!%p339_p10), 0.0   ;;  %v1395_v3 = vld [vmem:[%s1863_s4 + $0x48] sm:$0xff] (!%p339_p10)   ;;  %vm1514_vm0 = vmmov (!%p339_p10), 0   ;;  %v1397_v5 = vld [vmem:[%s1863_s4 + $0x50] sm:$0xff] (!%p339_p10)   ;;  %p404_p11 = scmp.lt.s32.totalorder (!%p339_p10), %s1503_s30, 1 }
   0xf   : > { %342 = sbr.rel (%p339_p10) target bundleno = 542 (0x21e), region = 52  ;;  %1270 = vmatprep.subr.bf16.mxu0 (!%p339_p10), %v1513_v1  ;;  %1290 = vmatprep.subr.bf16.mxu1 (!%p339_p10), %v1513_v1  ;;  %v1394_v2 = vld [vmem:[%s1863_s4] sm:$0xff] (!%p339_p10)   ;;  %v1396_v4 = vld [vmem:[%s1863_s4 + $0x8] sm:$0xff] (!%p339_p10)   ;;  %v1398_v6 = vld [vmem:[%s1863_s4 + $0x10] sm:$0xff] (!%p339_p10)   ;;  %s401_s24 = sand.u32 (!%p339_p10), 1, %s1495_s28   ;;  %vm1014_vm3 = vcmask (!%p339_p10), 122880  }
  0x10   : > { %1271 = vmatpush3.bf16.msra.mxu0 (!%p339_p10), %v1393_v0  ;;  %1286 = vmatprep.mubr.msk.bf16.mxu0 (!%p339_p10), %vm1514_vm0, %v1513_v1  ;;  %v1399_v7 = vld [vmem:[%s1863_s4 + $0x58] sm:$0xff] (!%p339_p10)   ;;  %v1401_v9 = vld [vmem:[%s1863_s4 + $0x60] sm:$0xff] (!%p339_p10)   ;;  %v1403_v11 = vld [vmem:[%s1863_s4 + $0x68] sm:$0xff] (!%p339_p10)   ;;  %s402_s11 = scalar_lea.vmem (!%p339_p10), [#allocation2], %s401_s24 }
  0x11   : > { %1291 = vmatpush3.bf16.msra.mxu1 (!%p339_p10), %v1394_v2  ;;  %1272 = vmatprep.subr.bf16.mxu0 (!%p339_p10), %v1513_v1  ;;  %v1400_v8 = vld [vmem:[%s1863_s4 + $0x18] sm:$0xff] (!%p339_p10)   ;;  %v1402_v10 = vld [vmem:[%s1863_s4 + $0x20] sm:$0xff] (!%p339_p10)   ;;  %v1404_v12 = vld [vmem:[%s1863_s4 + $0x28] sm:$0xff] (!%p339_p10)   ;;  %s1030_s12 = sshll.u32 (!%p339_p10), %s402_s11, 4  ;;  %s1814_s12 = int_to_ptr.vmem [resolvable:$true] %s1030_s12 }
  0x12   : > { %1292 = vmatprep.subr.bf16.mxu1 (!%p339_p10), %v1513_v1  ;;  %1306 = vmatprep.mubr.msk.bf16.mxu1 (!%p339_p10), %vm1514_vm0, %v1513_v1  ;;  %v1405_v13 = vld [vmem:[%s1863_s4 + $0x70] sm:$0xff] (!%p339_p10)   ;;  %v1407_v15 = vld [vmem:[%s1863_s4 + $0x78] sm:$0xff] (!%p339_p10)   ;;  %v1409_v21 = vld [vmem:[%s1863_s4 + $0x100] sm:$0xff] (!%p339_p10)  }
  0x13   : > { %v1406_v14 = vld [vmem:[%s1863_s4 + $0x30] sm:$0xff] (!%p339_p10)   ;;  %v1408_v17 = vld [vmem:[%s1863_s4 + $0x38] sm:$0xff] (!%p339_p10)   ;;  %v1410_v24 = vld [vmem:[%s1863_s4 + $0x80] sm:$0xff] (!%p339_p10)  }
  0x14   : > { %1273 = vmatpush3.bf16.msra.mxu0 (!%p339_p10), %v1395_v3  ;;  %v1411_v25 = vld [vmem:[%s1863_s4 + $0xc0] sm:$0xff] (!%p339_p10)   ;;  %v1412_v26 = vld [vmem:[%s1863_s4 + $0x108] sm:$0xff] (!%p339_p10)   ;;  %v1415_v29 = vld [vmem:[%s1863_s4 + $0x110] sm:$0xff] (!%p339_p10)  }
  0x15   : > { %1293 = vmatpush3.bf16.msra.mxu1 (!%p339_p10), %v1396_v4  ;;  %1274 = vmatprep.subr.bf16.mxu0 (!%p339_p10), %v1513_v1  ;;  %v1413_v27 = vld [vmem:[%s1863_s4 + $0x88] sm:$0xff] (!%p339_p10)   ;;  %v1416_v30 = vld [vmem:[%s1863_s4 + $0x90] sm:$0xff] (!%p339_p10)   ;;  %v1418_v32 = vld [vmem:[%s1863_s4 + $0x118] sm:$0xff] (!%p339_p10)  }
  0x16   : > { %1294 = vmatprep.subr.bf16.mxu1 %v1513_v1  ;;  %s1657_s25 = scalar_select %p404_p11, %s1503_s30, 1  ;;  %v1414_v28 = vld [vmem:[%s1863_s4 + $0xc8] sm:$0xff]   ;;  %v1417_v31 = vld [vmem:[%s1863_s4 + $0xd0] sm:$0xff]   ;;  %v1419_v35 = vld [vmem:[%s1863_s4 + $0x98] sm:$0xff]  }
  0x17   : > { %v1420_v37 = vld [vmem:[%s1863_s4 + $0xd8] sm:$0xff]   ;;  %v1421_v38 = vld [vmem:[%s1863_s4 + $0x120] sm:$0xff]   ;;  %v1424_v41 = vld [vmem:[%s1863_s4 + $0x128] sm:$0xff]  }
  0x18   : > { %1275 = vmatpush3.bf16.msra.mxu0 %v1397_v5  ;;  %s1668_s16 = sshll.u32 %s1657_s25, 4  ;;  %s1218_s14 = sshll.u32 %s1657_s25, 5  ;;  %v1422_v39 = vld [vmem:[%s1863_s4 + $0xa0] sm:$0xff]   ;;  %v1425_v42 = vld [vmem:[%s1863_s4 + $0xa8] sm:$0xff]   ;;  %v1427_v44 = vld [vmem:[%s1863_s4 + $0x130] sm:$0xff]  }
  0x19   : > { %1295 = vmatpush3.bf16.msra.mxu1 %v1398_v6  ;;  %1276 = vmatprep.subr.bf16.mxu0 %v1513_v1  ;;  %s421_s23 = scalar_lea.vmem %s1860_s1, %s1668_s16  ;;  %s411_s20 = scalar_lea.vmem %s1859_s0, %s1668_s16  ;;  %v1423_v40 = vld [vmem:[%s1863_s4 + $0xe0] sm:$0xff]   ;;  %v1426_v43 = vld [vmem:[%s1863_s4 + $0xe8] sm:$0xff]   ;;  %v1428_v45 = vld [vmem:[%s1863_s4 + $0xb0] sm:$0xff]  }
  0x1a   : > { %1296 = vmatprep.subr.bf16.mxu1 %v1513_v1  ;;  %v464_v16 = vld [vmem:[%s421_s23] sm:$0xff]  ;;  %v465_v18 = vld [vmem:[%s421_s23 + $0x8] sm:$0xff]  ;;  %s1731_s26 = scalar_lea.vmem %s1862_s3, %s1218_s14  ;;  %v1429_v46 = vld [vmem:[%s1863_s4 + $0xf0] sm:$0xff]   ;;  %s431_s22 = scalar_lea.vmem %s1861_s2, %s1668_s16 }
  0x1b   : > { %v445_v19 = vld [vmem:[%s411_s20] sm:$0xff]  ;;  %v446_v20 = vld [vmem:[%s411_s20 + $0x8] sm:$0xff]  ;;  %v466_v22 = vpack.c.bf16 %v465_v18, %v464_v16  ;;  %v774_v34 = vld [vmem:[%s1731_s26 + $0x18] sm:$0xff]  ;;  %s1212_s25 = sshll.u32 %s1503_s30, 4  ;;  %s1433_s14 = scalar_lea.vmem %s1814_s12, 16 }
  0x1c   : > { %1277 = vmatpush3.bf16.msra.mxu0 %v1399_v7  ;;  %v447_v23 = vpack.c.bf16 %v446_v20, %v445_v19  ;;  %v772_v33 = vld [vmem:[%s1731_s26 + $0x8] sm:$0xff]  ;;  %v1430_v47 = vld [vmem:[%s1863_s4 + $0x138] sm:$0xff]   ;;  %v661_v49 = vld [vmem:[%s431_s22] sm:$0xff]  ;;  %s1812_s16 = scalar_lea.hbm %s1867_s8, %s1212_s25  ;;  %p1434_p12 = scmp.ne.s32.totalorder %s1814_s12, %s1433_s14 }
  0x1d   : > { %1297 = vmatpush3.bf16.msra.mxu1 %v1400_v8  ;;  %1278 = vmatprep.subr.bf16.mxu0 %v1513_v1  ;;  %v776_v36 = vpack.c.bf16 %v774_v34, %v772_v33  ;;  %v1431_v48 = vld [vmem:[%s1863_s4 + $0xb8] sm:$0xff]   ;;  %v662_v50 = vld [vmem:[%s431_s22 + $0x8] sm:$0xff]  ;;  %v771_v52 = vld [vmem:[%s1731_s26] sm:$0xff]  ;;  %s1515_s30 = smov [#allocation2]  }
  0x1e   : > { %1298 = vmatprep.subr.bf16.mxu1 %v1513_v1  ;;  %v1432_v51 = vld [vmem:[%s1863_s4 + $0xf8] sm:$0xff]   ;;  %v773_v53 = vld [vmem:[%s1731_s26 + $0x10] sm:$0xff]  ;;  %v663_v54 = vpack.c.bf16 %v662_v50, %v661_v49  ;;  %v1211_v16 = vld [vmem:[%s1865_s6] ss:$0 sm:$0xff]  ;;  %s1017_s26 = scalar_lea.sflag [#allocation3], %s401_s24  ;;  %p1435_p13 = pnand %p1434_p12, %p1601_p4 }
  0x1f   : > { %v775_v55 = vpack.c.bf16 %v773_v53, %v771_v52  ;;  %s1437_s21 = sshll.u32 %s1515_s30, 4  ;;  %s1438_s21 = int_to_ptr.vmem [resolvable:$false] %s1437_s21 }
  0x20   : > { %1279 = vmatpush3.bf16.msra.mxu0 %v1401_v9  ;;  %p1436_p0 = pneg %p1435_p13  ;;  %s1439_s20 = scalar_lea.vmem %s1438_s21, 32 }
  0x21   : > { %1299 = vmatpush3.bf16.msra.mxu1 %v1402_v10  ;;  %1280 = vmatprep.subr.bf16.mxu0 %v1513_v1  ;;  %p1440_p1 = scmp.lt.s32.totalorder %s1814_s12, %s1438_s21  ;;  %p1441_p2 = scmp.lt.s32.totalorder %s1439_s20, %s1433_s14 }
  0x22   : > { %1300 = vmatprep.subr.bf16.mxu1 %v1513_v1 }
  0x23   : > { %p1442_p3 = por %p1441_p2, %p1440_p1 }
  0x24   : > { %1281 = vmatpush3.bf16.msra.mxu0 %v1403_v11 }
  0x25   : > { %1301 = vmatpush3.bf16.msra.mxu1 %v1404_v12  ;;  %1282 = vmatprep.subr.bf16.mxu0 %v1513_v1  ;;  %v1210_v12 = vld [vmem:[%s1864_s5] ss:$0 sm:$0xff]  ;;  %p1443_p5 = pnand %p1442_p3, %p1436_p0 }
  0x26   : > { %1302 = vmatprep.subr.bf16.mxu1 %v1513_v1 }
  0x28   : > { %1283 = vmatpush3.bf16.msra.mxu0 %v1405_v13 }
  0x29   : > { %1303 = vmatpush3.bf16.msra.mxu1 %v1406_v14  ;;  %1284 = vmatprep.subr.bf16.mxu0 %v1513_v1 }
  0x2a   : > { %1304 = vmatprep.subr.bf16.mxu1 %v1513_v1 }
  0x2c   : > { %1285 = vmatpush3.bf16.msra.mxu0 %v1407_v15 }
  0x2d   : > { %1305 = vmatpush3.bf16.msra.mxu1 %v1408_v17  ;;  %1310 = vmatprep.subr.bf16.mxu0 %v1513_v1 }
  0x2e   : > { %1246 = vmatprep.subr.bf16.mxu1 %v1409_v21 }
  0x2f   : > { %1287 = vmatmul.mubr.bf16.vlgmr.msra.gmra.mrb[0].mxu0 %v466_v22 }
  0x30   : > { %1307 = vmatmul.mubr.bf16.vlgmr.msra.gmra.mrb[0].mxu1 %v447_v23  ;;  %1311 = vmatpush3.bf16.msra.mxu0 %v1410_v24 }
  0x31   : > { %1247 = vmatpush3.bf16.msra.mxu1 %v1411_v25  ;;  %1312 = vmatprep.subr.bf16.mxu0 %v1513_v1 }
  0x32   : > { %1248 = vmatprep.subr.bf16.mxu1 %v1412_v26  ;;  %1326 = vmatprep.mubr.msk.bf16.mxu0 %vm1514_vm0, %v1513_v1 }
  0x33   : > { %937 = vmatprep.mubr.bf16.mxu1 %v776_v36 }
  0x34   : > { %1313 = vmatpush3.bf16.msra.mxu0 %v1413_v27  ;;  %v972_v27 = vld [vmem:[%s1866_s7] sm:$0x1] }
  0x35   : > { %1249 = vmatpush3.bf16.msra.mxu1 %v1414_v28  ;;  %1314 = vmatprep.subr.bf16.mxu0 %v1513_v1 }
  0x36   : > { %1250 = vmatprep.subr.bf16.mxu1 %v1415_v29 }
  0x38   : > { %1315 = vmatpush3.bf16.msra.mxu0 %v1416_v30 }
  0x39   : > { %1251 = vmatpush3.bf16.msra.mxu1 %v1417_v31  ;;  %1316 = vmatprep.subr.bf16.mxu0 %v1513_v1 }
  0x3a   : > { %1252 = vmatprep.subr.bf16.mxu1 %v1418_v32 }
  0x3c   : > { %1317 = vmatpush3.bf16.msra.mxu0 %v1419_v35 }
  0x3d   : > { %1253 = vmatpush3.bf16.msra.mxu1 %v1420_v37  ;;  %1318 = vmatprep.subr.bf16.mxu0 %v1513_v1 }
  0x3e   : > { %1254 = vmatprep.subr.bf16.mxu1 %v1421_v38 }
  0x40   : > { %1319 = vmatpush3.bf16.msra.mxu0 %v1422_v39 }
  0x41   : > { %1255 = vmatpush3.bf16.msra.mxu1 %v1423_v40  ;;  %1320 = vmatprep.subr.bf16.mxu0 %v1513_v1 }
  0x42   : > { %1256 = vmatprep.subr.bf16.mxu1 %v1424_v41 }
  0x44   : > { %1321 = vmatpush3.bf16.msra.mxu0 %v1425_v42 }
  0x45   : > { %1257 = vmatpush3.bf16.msra.mxu1 %v1426_v43  ;;  %1322 = vmatprep.subr.bf16.mxu0 %v1513_v1 }
  0x46   : > { %1258 = vmatprep.subr.bf16.mxu1 %v1427_v44 }
  0x48   : > { %1323 = vmatpush3.bf16.msra.mxu0 %v1428_v45 }
  0x49   : > { %1259 = vmatpush3.bf16.msra.mxu1 %v1429_v46  ;;  %1324 = vmatprep.subr.bf16.mxu0 %v1513_v1 }
  0x4a   : > { %1260 = vmatprep.subr.bf16.mxu1 %v1430_v47 }
  0x4c   : > { %1325 = vmatpush3.bf16.msra.mxu0 %v1431_v48 }
  0x4d   : > { %1261 = vmatpush3.bf16.msra.mxu1 %v1432_v51  ;;  %1330 = vmatprep.subr.bf16.mxu0 %v1513_v1 }
  0x4f   : > { %1327 = vmatmul.mubr.bf16.vlgmr.msra.gmra.mrb[4].mxu0 %v663_v54 }
  0x50   : > { %938 = vmatmul.mubr.bf16.vlgmr.msra.gmra.mrb[4].mxu1 %v775_v55  ;;  %1332 = vmatprep.mubr.msk.bf16.mxu0 %vm1514_vm0, %v1513_v1 }
 0x102   : > { %v565_v56 = vpop.f32.mrb[0].mxu0 }
 0x103   : > { %v654_v57 = vpop.f32.mrb[0].mxu1  ;;  %v1288_v58 = vpop.f32.mrb[1].mxu0 }
 0x104   : > { %v655_v59 = vadd.f32 %v654_v57, %v565_v56  ;;  %v1308_v60 = vpop.f32.mrb[1].mxu1  ;;  %v568_v61 = vpop.f32.mrb[2].mxu0 }
 0x105   : > { %v657_v62 = vpop.f32.mrb[2].mxu1  ;;  %v1289_v63 = vpop.f32.mrb[3].mxu0 }
 0x106   : > { %v658_v0 = vadd.f32 %v657_v62, %v568_v61  ;;  %v1309_v2 = vpop.f32.mrb[3].mxu1 }
 0x122   : > { %v762_v3 = vpop.f32.mrb[4].mxu0 }
 0x123   : > { %v769_v4 = vadd.f32 %v762_v3, %v655_v59  ;;  %v1262_v5 = vpop.f32.mrb[4].mxu1  ;;  %v1328_v6 = vpop.f32.mrb[5].mxu0 }
 0x124   : > { %v1263_v7 = vpop.f32.mrb[5].mxu1  ;;  %v765_v8 = vpop.f32.mrb[6].mxu0 }
 0x125   : > { %v1264_v9 = vadd.f32 %v1263_v7, %v1262_v5  ;;  %v770_v10 = vadd.f32 %v765_v8, %v658_v0  ;;  %v1265_v11 = vpop.f32.mrb[6].mxu1  ;;  %v1329_v1 = vpop.f32.mrb[7].mxu0 }
 0x126   : > { %v1266_v13 = vpop.f32.mrb[7].mxu1 }
 0x127   : > { %v946_v14 = vadd.f32 %v1264_v9, %v769_v4  ;;  %v1267_v15 = vadd.f32 %v1266_v13, %v1265_v11 }
 0x129   : > { %v955_v17 = vmul.f32 %v1210_v12, %v946_v14  ;;  %v947_v18 = vadd.f32 %v1267_v15, %v770_v10 }
 0x12b   : > { %v964_v19 = vadd.f32 %v1211_v16, %v955_v17  ;;  %v956_v20 = vmul.f32 %v1210_v12, %v947_v18 }
 0x12d   : > { %v968_v21 = vmul.f32 0.2, %v964_v19  ;;  %v965_v22 = vadd.f32 %v1211_v16, %v956_v20  ;;  %vm966_vm1 = vcmp.gt.f32.partialorder %v964_v19, 0.0 }
 0x12f   : > { %v969_v23 = vmul.f32 0.2, %v965_v22  ;;  %vm967_vm2 = vcmp.gt.f32.partialorder %v965_v22, 0.0  ;;  %v970_v24 = vsel %vm966_vm1, %v964_v19, %v968_v21 }
 0x131   : > { %v971_v25 = vsel %vm967_vm2, %v965_v22, %v969_v23 }
 0x132   : > { %v973_v26 = vpack.c.bf16 %v971_v25, %v970_v24 }
 0x134   : > { %1331 = vmatpush3.bf16.xpose.msra.mxu0 %v973_v26 }
 0x13b   : > { %1333 = vmatmul.mubr.bf16.vlgmr.msra.gmra.mrb[8].mxu0 %v972_v27 }
 0x20e   : > { %v1008_v28 = vpop.f32.mrb[8].mxu0 }
 0x20f   : > { %1015 = vst.msk [vmem:[%s402_s11] sm:$0x1] %vm1014_vm3, %v1008_v28  ;;  %v1334_v29 = vpop.f32.mrb[9].mxu0 }
 0x210   : > { %v1011_v30 = vpop.f32.mrb[10].mxu0 }
 0x211   : > { %1446 = shalt.err (!%p1443_p5)
}
 0x212   : > { %s1447_s22 = scalar_lea.hbm %s1812_s16, 16  ;;  %s1451_s11 = scalar_lea.hbm %s1867_s8, 32 }
 0x213   : > { %p1448_p6 = scmp.ne.s32.totalorder %s1812_s16, %s1447_s22  ;;  %p1452_p10 = scmp.lt.u32.totalorder %s1812_s16, %s1867_s8 }
 0x214   : > { %p1453_p11 = scmp.lt.u32.totalorder %s1451_s11, %s1447_s22  ;;  %p1455_p13 = scmp.lt.u32.totalorder %s1447_s22, %s1812_s16 }
 0x215   : > { %p1449_p7 = pnand %p1448_p6, %p1601_p4 }
 0x216   : > { %p1454_p12 = por %p1453_p11, %p1452_p10 }
 0x217   : > { %p1450_p9 = pneg %p1449_p7 }
 0x218   : > { %p1456_p0 = por %p1455_p13, %p1454_p12 }
 0x21a   : > { %p1457_p1 = pnand %p1456_p0, %p1450_p9 }
 0x21c   : > { %1460 = shalt.err (!%p1457_p1)
}
 0x21d   : > { %1336 = dma.vmem_to_hbm [thread:$0]  (%p1601_p4), %s1814_s12, 16, %s1812_s16, %s1017_s26   ;;  %v1335_v31 = vpop.f32.mrb[11].mxu0 }
 0x21e PF: > { %p1342_p2 = scmp.ge.s32.totalorder %s1511_s10, 2  ;;  %s1042_s14 = sand.u32 1, %s1491_s27  }
 0x21f   : > { %s1043_s30 = scalar_lea.sflag [#allocation3], %s1042_s14 }
 0x220   : > { %p1339_p3 = pnand %p1342_p2, %p1608_p8 }
 0x222   : > { %1486 = dma.done.wait (!%p1339_p3), %s1043_s30, 16  }
 0x223   : > { %1488 = vsyncadd (!%p1339_p3), %s1043_s30, 4294967280  ;;  %s21_s10 = sadd.s32 1, %s1511_s10   ;;  %s1870_s27 = smov %s1495_s28 }
 0x224   : > { %p18_p5 = scmp.ge.s32.totalorder %s21_s10, 4   ;;  %s1871_s28 = smov %s1499_s29 }
 0x225   : > { %s1872_s29 = smov %s1614_s18  ;;  %s1873_s30 = smov %s1507_s9 }
 0x226   : > { %s1874_s9 = smov %s1876_s13  ;;  %20 = sbr.rel (!%p18_p5) target bundleno = 4 (0x4), region = 96 }
 0x22d   :  { %1047 = vsyncpa [#allocation3], 1 }
 0x22e   :  { %1049 = vsyncpa [#allocation3 + $0x1], 1 }

</bundles_post_ra>
